<compile_context>
chip_gen: v6e
topology: v6e:2x2x1
jax: 0.10.0
libtpu: 0.0.40
codegen_flags: <defaults>
</compile_context>

<pallas_src>
import jax
import jax.numpy as jnp
from jax.experimental import pallas as pl
from jax.experimental.pallas import tpu as pltpu
import numpy as np

# ---- model hyper-parameters (small, consistent with the module) -------------
BATCH = 2
SEQ = 8
INPUT_SIZE = 16
HIDDEN = 32          # stand-in for hidden_size=1000 at small scale
NUM_LAYERS = 4

# ---- padded kernel geometry (lane / sublane aligned) -------------------------
B_PAD = 8              # sublane-aligned batch (2 -> 8)
H_PAD = 128            # lane-aligned hidden  (32 -> 128)
D_PAD = 128            # input features padded into the same 128-lane slab
GATES_PAD = 4 * H_PAD  # 512, each gate on a 128-lane boundary
ROWS = SEQ * B_PAD     # 64 time-major rows, row = t * B_PAD + b


# ---- Pallas kernel: one grid step == one LSTM layer ---------------------------
def lstm_layer_kernel(x_ref,     # (ROWS, D_PAD)            f32, whole input seq
                      wih_ref,   # (1, D_PAD, GATES_PAD)    bf16, this layer's W_ih
                      whh_ref,   # (1, H_PAD, GATES_PAD)    bf16, this layer's W_hh
                      b_ref,     # (1, 1, GATES_PAD)        f32,  b_ih + b_hh
                      fcw_ref,   # (1, H_PAD)               f32,  final linear weight
                      fcb_ref,   # (1, 1)                   f32,  final linear bias
                      out_ref,   # (B_PAD, H_PAD)           f32,  lane-dense out slab
                      seq_ref,   # VMEM (ROWS, H_PAD)       f32,  layer in/out sequence
                      gx_ref):   # VMEM (ROWS, GATES_PAD)   f32,  x->gate projections
    l = pl.program_id(0)

    # Layer 0 consumes the padded external input; deeper layers consume the
    # previous layer's h sequence left in the persistent scratch.
    @pl.when(l == 0)
    def _():
        seq_ref[...] = x_ref[...]

    # Input projection for ALL timesteps in one MXU pass; bias added once here
    # (hoisted out of the recurrence).
    gx_ref[...] = (
        jnp.dot(seq_ref[...].astype(jnp.bfloat16), wih_ref[0],
                preferred_element_type=jnp.float32)
        + b_ref[0])                                            # (ROWS, 4*H_PAD)

    w_hh = whh_ref[0]                                          # (H_PAD, 4*H_PAD) bf16

    h = jnp.zeros((B_PAD, H_PAD), jnp.float32)
    c = jnp.zeros((B_PAD, H_PAD), jnp.float32)

    # Recurrence: only the small (8,128)x(128,512) h-projection stays per step.
    for t in range(SEQ):                                       # static unroll
        row = t * B_PAD
        gates = gx_ref[row:row + B_PAD, :] + jnp.dot(
            h.astype(jnp.bfloat16), w_hh, preferred_element_type=jnp.float32)
        # gate order (i, f, g, o), each slice 128-lane aligned; f32 gate math
        i_g = jax.nn.sigmoid(gates[:, 0 * H_PAD:1 * H_PAD])
        f_g = jax.nn.sigmoid(gates[:, 1 * H_PAD:2 * H_PAD])
        g_g = jnp.tanh(gates[:, 2 * H_PAD:3 * H_PAD])
        o_g = jax.nn.sigmoid(gates[:, 3 * H_PAD:4 * H_PAD])
        c = f_g * c + i_g * g_g
        h = o_g * jnp.tanh(c)
        seq_ref[row:row + B_PAD, :] = h        # becomes next layer's input at t

    # Final Linear(H -> 1) on the top layer's last-timestep hidden:
    # VPU multiply + lane reduction, broadcast into a lane-dense output slab.
    @pl.when(l == NUM_LAYERS - 1)
    def _():
        r = jnp.sum(h * fcw_ref[...], axis=-1, keepdims=True) + fcb_ref[...]
        out_ref[...] = jnp.broadcast_to(r, (B_PAD, H_PAD))


# ---- wrapper -----------------------------------------------------------------
def lstm_model_forward(x_bsd, packed_params):
    """x_bsd: (B, S, D) float32 (PyTorch batch_first layout)."""
    wih, whh, b, fcw_pad, fcb_pad = packed_params

    # time-major, pad batch to 8 sublanes / features into a 128-lane slab,
    # then flatten (S, B_PAD) into the sublane dimension: row = t*B_PAD + b.
    x_sbd = jnp.transpose(x_bsd, (1, 0, 2))                    # (S, B, D)
    x_pad = jnp.zeros((SEQ, B_PAD, D_PAD), jnp.float32)
    x_pad = x_pad.at[:, :BATCH, :INPUT_SIZE].set(x_sbd)
    x_rows = x_pad.reshape(ROWS, D_PAD)                        # (64, 128)

    grid_spec = pltpu.PrefetchScalarGridSpec(
        num_scalar_prefetch=0,
        grid=(NUM_LAYERS,),                                    # one step per layer
        in_specs=[
            pl.BlockSpec((ROWS, D_PAD), lambda l: (0, 0)),                 # x (once)
            pl.BlockSpec((1, D_PAD, GATES_PAD), lambda l: (l, 0, 0)),      # W_ih[l]
            pl.BlockSpec((1, H_PAD, GATES_PAD), lambda l: (l, 0, 0)),      # W_hh[l]
            pl.BlockSpec((1, 1, GATES_PAD), lambda l: (l, 0, 0)),          # bias[l]
            pl.BlockSpec((1, H_PAD), lambda l: (0, 0)),                    # fc weight
            pl.BlockSpec((1, 1), lambda l: (0, 0)),                        # fc bias
        ],
        out_specs=pl.BlockSpec((B_PAD, H_PAD), lambda l: (0, 0)),
        scratch_shapes=[
            pltpu.VMEM((ROWS, H_PAD), jnp.float32),            # layer i/o sequence
            pltpu.VMEM((ROWS, GATES_PAD), jnp.float32),        # x->gate projections
        ],
    )

    out_pad = pl.pallas_call(
        lstm_layer_kernel,
        out_shape=jax.ShapeDtypeStruct((B_PAD, H_PAD), jnp.float32),
        grid_spec=grid_spec,
        compiler_params=pltpu.CompilerParams(
            dimension_semantics=("arbitrary",)),               # layers are sequential
    )(x_rows, wih, whh, b, fcw_pad, fcb_pad)

    return out_pad[:BATCH, 0:1]                                # (B, 1)


# ---- parameter construction (PyTorch-style uniform init) ---------------------
def make_params(key):
    """Torch-like params: per-layer W_ih^T (in,4H), W_hh^T (H,4H), bias (4H,)."""
    bound = 1.0 / np.sqrt(HIDDEN)
    keys = jax.random.split(key, 4 * NUM_LAYERS + 2)
    k = iter(keys)

    def u(kk, shape):
        return jax.random.uniform(kk, shape, jnp.float32, -bound, bound)

    wih, whh, bias = [], [], []
    for l in range(NUM_LAYERS):
        in_dim = INPUT_SIZE if l == 0 else HIDDEN
        wih.append(u(next(k), (in_dim, 4 * HIDDEN)))
        whh.append(u(next(k), (HIDDEN, 4 * HIDDEN)))
        b_ih = u(next(k), (4 * HIDDEN,))
        b_hh = u(next(k), (4 * HIDDEN,))
        bias.append(b_ih + b_hh)
    fcw = u(next(k), (HIDDEN, 1))
    fcb = u(next(k), (1, 1))
    return wih, whh, bias, fcw, fcb


def pack_params(params):
    """Zero-pad onto lane-aligned gate blocks; weights -> bf16 (MXU operands).

    Gate g of layer l lives in columns [g*H_PAD, g*H_PAD + HIDDEN); padded
    weight rows/cols and bias are zero, so padded hidden lanes stay exactly 0
    through the recurrence (sigmoid(0)*0 + sigmoid(0)*tanh(0) = 0).
    """
    wih, whh, bias, fcw, fcb = params
    wih_l, whh_l, b_l = [], [], []
    for l in range(NUM_LAYERS):
        in_dim = INPUT_SIZE if l == 0 else HIDDEN
        wih_full = jnp.zeros((D_PAD, GATES_PAD), jnp.float32)
        whh_full = jnp.zeros((H_PAD, GATES_PAD), jnp.float32)
        b_full = jnp.zeros((1, GATES_PAD), jnp.float32)
        for g in range(4):
            cols = slice(g * H_PAD, g * H_PAD + HIDDEN)
            wih_full = wih_full.at[:in_dim, cols].set(
                wih[l][:, g * HIDDEN:(g + 1) * HIDDEN])
            whh_full = whh_full.at[:HIDDEN, cols].set(
                whh[l][:, g * HIDDEN:(g + 1) * HIDDEN])
            b_full = b_full.at[0, cols].set(
                bias[l][g * HIDDEN:(g + 1) * HIDDEN])
        wih_l.append(wih_full)
        whh_l.append(whh_full)
        b_l.append(b_full)
    wih_p = jnp.stack(wih_l).astype(jnp.bfloat16)              # (L, 128, 512) bf16
    whh_p = jnp.stack(whh_l).astype(jnp.bfloat16)              # (L, 128, 512) bf16
    b_p = jnp.stack(b_l)[:, None, :][:, 0:1, :]                # (L, 1, 512) f32
    b_p = jnp.stack(b_l).reshape(NUM_LAYERS, 1, GATES_PAD)
    fcw_pad = jnp.zeros((1, H_PAD), jnp.float32).at[0, :HIDDEN].set(fcw[:, 0])
    fcb_pad = jnp.reshape(fcb, (1, 1))
    return wih_p, whh_p, b_p, fcw_pad, fcb_pad


# ---- pure-JAX reference (unpadded f32, for correctness check) ----------------
def reference_forward(x_bsd, params):
    wih, whh, bias, fcw, fcb = params
    B = x_bsd.shape[0]
    h = [jnp.zeros((B, HIDDEN), jnp.float32) for _ in range(NUM_LAYERS)]
    c = [jnp.zeros((B, HIDDEN), jnp.float32) for _ in range(NUM_LAYERS)]
    x_sbd = jnp.transpose(x_bsd, (1, 0, 2))
    for t in range(SEQ):
        inp = x_sbd[t]
        for l in range(NUM_LAYERS):
            gates = inp @ wih[l] + h[l] @ whh[l] + bias[l][None, :]
            i_g = jax.nn.sigmoid(gates[:, 0 * HIDDEN:1 * HIDDEN])
            f_g = jax.nn.sigmoid(gates[:, 1 * HIDDEN:2 * HIDDEN])
            g_g = jnp.tanh(gates[:, 2 * HIDDEN:3 * HIDDEN])
            o_g = jax.nn.sigmoid(gates[:, 3 * HIDDEN:4 * HIDDEN])
            c[l] = f_g * c[l] + i_g * g_g
            h[l] = o_g * jnp.tanh(c[l])
            inp = h[l]
    return h[-1] @ fcw + fcb


if __name__ == "__main__":
    key = jax.random.PRNGKey(0)
    k_x, k_p = jax.random.split(key)
    x = jax.random.normal(k_x, (BATCH, SEQ, INPUT_SIZE), jnp.float32)
    params = make_params(k_p)
    packed = pack_params(params)

    out = lstm_model_forward(x, packed)
    out = jax.block_until_ready(out)

    ref = jax.block_until_ready(reference_forward(x, params))
    assert out.shape == (BATCH, 1)
    # bf16 MXU operands (per perf review) => loosened tolerance vs f32 reference.
    np.testing.assert_allclose(np.asarray(out), np.asarray(ref),
                               rtol=5e-2, atol=3e-2)
    print("KERNEL_OK")
</pallas_src>

<mosaic_0001>
module attributes {stable_mosaic.version = 11 : i64} {
  func.func @lstm_layer_kernel(%arg0: i32, %arg1: memref<64x128xf32, #tpu.memory_space<vmem>>, %arg2: memref<1x128x512xbf16, #tpu.memory_space<vmem>>, %arg3: memref<1x128x512xbf16, #tpu.memory_space<vmem>>, %arg4: memref<1x1x512xf32, #tpu.memory_space<vmem>>, %arg5: memref<1x128xf32, #tpu.memory_space<vmem>>, %arg6: memref<1x1xf32, #tpu.memory_space<vmem>>, %arg7: memref<8x128xf32, #tpu.memory_space<vmem>>, %arg8: memref<64x128xf32, #tpu.memory_space<vmem>>, %arg9: memref<64x512xf32, #tpu.memory_space<vmem>>) attributes {dimension_semantics = [#tpu.dimension_semantics<arbitrary>], iteration_bounds = array<i64: 4>, scalar_prefetch = 0 : i64, scratch_operands = 2 : i64, tpu.core_type = #tpu.core_type<tc>, window_params = [{pipeline_mode = #tpu.pipeline_mode<synchronous>, transform_indices = @transform_0, window_bounds = array<i64: 64, 128>}, {transform_indices = @transform_1, window_bounds = array<i64: 1, 128, 512>}, {transform_indices = @transform_2, window_bounds = array<i64: 1, 128, 512>}, {transform_indices = @transform_3, window_bounds = array<i64: 1, 1, 512>}, {pipeline_mode = #tpu.pipeline_mode<synchronous>, transform_indices = @transform_4, window_bounds = array<i64: 1, 128>}, {pipeline_mode = #tpu.pipeline_mode<synchronous>, transform_indices = @transform_5, window_bounds = array<i64: 1, 1>}, {pipeline_mode = #tpu.pipeline_mode<synchronous>, transform_indices = @transform_6, window_bounds = array<i64: 8, 128>}]} {
    %c0_i32 = arith.constant 0 : i32
    %0 = arith.cmpi eq, %arg0, %c0_i32 : i32
    %1 = arith.extui %0 : i1 to i32
    %c0_i32_0 = arith.constant 0 : i32
    %2 = arith.cmpi ne, %1, %c0_i32_0 : i32
    scf.if %2 {
      %c0_73 = arith.constant 0 : index
      %c0_74 = arith.constant 0 : index
      %260 = vector.load %arg1[%c0_73, %c0_74] : memref<64x128xf32, #tpu.memory_space<vmem>>, vector<64x128xf32>
      %c0_75 = arith.constant 0 : index
      %c0_76 = arith.constant 0 : index
      %261 = vector.load %arg8[%c0_75, %c0_76] : memref<64x128xf32, #tpu.memory_space<vmem>>, vector<64x128xf32>
      tpu.vector_store %arg8[%c0_75, %c0_76], %260 {strides = array<i32>} : memref<64x128xf32, #tpu.memory_space<vmem>>, vector<64x128xf32>,
    } else {
    }
    %c0 = arith.constant 0 : index
    %c0_1 = arith.constant 0 : index
    %3 = vector.load %arg8[%c0, %c0_1] : memref<64x128xf32, #tpu.memory_space<vmem>>, vector<64x128xf32>
    %4 = arith.truncf %3 : vector<64x128xf32> to vector<64x128xbf16>
    %c0_2 = arith.constant 0 : index
    %c0_3 = arith.constant 0 : index
    %c0_4 = arith.constant 0 : index
    %5 = vector.load %arg2[%c0_2, %c0_3, %c0_4] : memref<1x128x512xbf16, #tpu.memory_space<vmem>>, vector<1x128x512xbf16>
    %6 = vector.shape_cast %5 : vector<1x128x512xbf16> to vector<128x512xbf16>
    %cst = arith.constant dense<0.000000e+00> : vector<64x512xf32>
    %7 = tpu.matmul %4, %6, %cst {dimension_numbers = #tpu.dot_dimension_numbers<[1], [0], [0], [1], [0, 0, 1, 1], [], []>} : vector<64x128xbf16>, vector<128x512xbf16>, vector<64x512xf32> -> vector<64x512xf32>
    %c0_5 = arith.constant 0 : index
    %c0_6 = arith.constant 0 : index
    %c0_7 = arith.constant 0 : index
    %8 = vector.load %arg4[%c0_5, %c0_6, %c0_7] : memref<1x1x512xf32, #tpu.memory_space<vmem>>, vector<1x1x512xf32>
    %9 = vector.shape_cast %8 : vector<1x1x512xf32> to vector<1x512xf32>
    %10 = vector.broadcast %9 : vector<1x512xf32> to vector<64x512xf32>
    %11 = arith.addf %7, %10 : vector<64x512xf32>
    %c0_8 = arith.constant 0 : index
    %c0_9 = arith.constant 0 : index
    %12 = vector.load %arg9[%c0_8, %c0_9] : memref<64x512xf32, #tpu.memory_space<vmem>>, vector<64x512xf32>
    tpu.vector_store %arg9[%c0_8, %c0_9], %11 {strides = array<i32>} : memref<64x512xf32, #tpu.memory_space<vmem>>, vector<64x512xf32>,
    %c0_10 = arith.constant 0 : index
    %c0_11 = arith.constant 0 : index
    %c0_12 = arith.constant 0 : index
    %13 = vector.load %arg3[%c0_10, %c0_11, %c0_12] : memref<1x128x512xbf16, #tpu.memory_space<vmem>>, vector<1x128x512xbf16>
    %14 = vector.shape_cast %13 : vector<1x128x512xbf16> to vector<128x512xbf16>
    %cst_13 = arith.constant 0.000000e+00 : f32
    %15 = vector.broadcast %cst_13 : f32 to vector<8x128xf32>
    %cst_14 = arith.constant 0.000000e+00 : f32
    %16 = vector.broadcast %cst_14 : f32 to vector<8x128xf32>
    %c0_15 = arith.constant 0 : index
    %c0_16 = arith.constant 0 : index
    %17 = vector.load %arg9[%c0_15, %c0_16] : memref<64x512xf32, #tpu.memory_space<vmem>>, vector<8x512xf32>
    %18 = arith.truncf %15 : vector<8x128xf32> to vector<8x128xbf16>
    %cst_17 = arith.constant dense<0.000000e+00> : vector<8x512xf32>
    %19 = tpu.matmul %18, %14, %cst_17 {dimension_numbers = #tpu.dot_dimension_numbers<[1], [0], [0], [1], [0, 0, 1, 1], [], []>} : vector<8x128xbf16>, vector<128x512xbf16>, vector<8x512xf32> -> vector<8x512xf32>
    %20 = arith.addf %17, %19 : vector<8x512xf32>
    %21 = vector.extract_strided_slice %20 {offsets = [0, 0], sizes = [8, 128], strides = [1, 1]} : vector<8x512xf32> to vector<8x128xf32>
    %22 = arith.negf %21 : vector<8x128xf32>
    %23 = math.exp %22 : vector<8x128xf32>
    %cst_18 = arith.constant 1.000000e+00 : f32
    %24 = vector.broadcast %cst_18 : f32 to vector<8x128xf32>
    %25 = arith.addf %24, %23 : vector<8x128xf32>
    %26 = arith.divf %24, %25 : vector<8x128xf32>
    %27 = vector.extract_strided_slice %20 {offsets = [0, 128], sizes = [8, 128], strides = [1, 1]} : vector<8x512xf32> to vector<8x128xf32>
    %28 = arith.negf %27 : vector<8x128xf32>
    %29 = math.exp %28 : vector<8x128xf32>
    %cst_19 = arith.constant 1.000000e+00 : f32
    %30 = vector.broadcast %cst_19 : f32 to vector<8x128xf32>
    %31 = arith.addf %30, %29 : vector<8x128xf32>
    %32 = arith.divf %30, %31 : vector<8x128xf32>
    %33 = vector.extract_strided_slice %20 {offsets = [0, 256], sizes = [8, 128], strides = [1, 1]} : vector<8x512xf32> to vector<8x128xf32>
    %34 = math.tanh %33 : vector<8x128xf32>
    %35 = vector.extract_strided_slice %20 {offsets = [0, 384], sizes = [8, 128], strides = [1, 1]} : vector<8x512xf32> to vector<8x128xf32>
    %36 = arith.negf %35 : vector<8x128xf32>
    %37 = math.exp %36 : vector<8x128xf32>
    %cst_20 = arith.constant 1.000000e+00 : f32
    %38 = vector.broadcast %cst_20 : f32 to vector<8x128xf32>
    %39 = arith.addf %38, %37 : vector<8x128xf32>
    %40 = arith.divf %38, %39 : vector<8x128xf32>
    %41 = arith.mulf %32, %16 : vector<8x128xf32>
    %42 = arith.mulf %26, %34 : vector<8x128xf32>
    %43 = arith.addf %41, %42 : vector<8x128xf32>
    %44 = math.tanh %43 : vector<8x128xf32>
    %45 = arith.mulf %40, %44 : vector<8x128xf32>
    %c0_21 = arith.constant 0 : index
    %c0_22 = arith.constant 0 : index
    %46 = vector.load %arg8[%c0_21, %c0_22] : memref<64x128xf32, #tpu.memory_space<vmem>>, vector<8x128xf32>
    tpu.vector_store %arg8[%c0_21, %c0_22], %45 {strides = array<i32>} : memref<64x128xf32, #tpu.memory_space<vmem>>, vector<8x128xf32>,
    %c8 = arith.constant 8 : index
    %c0_23 = arith.constant 0 : index
    %47 = vector.load %arg9[%c8, %c0_23] : memref<64x512xf32, #tpu.memory_space<vmem>>, vector<8x512xf32>
    %48 = arith.truncf %45 : vector<8x128xf32> to vector<8x128xbf16>
    %cst_24 = arith.constant dense<0.000000e+00> : vector<8x512xf32>
    %49 = tpu.matmul %48, %14, %cst_24 {dimension_numbers = #tpu.dot_dimension_numbers<[1], [0], [0], [1], [0, 0, 1, 1], [], []>} : vector<8x128xbf16>, vector<128x512xbf16>, vector<8x512xf32> -> vector<8x512xf32>
    %50 = arith.addf %47, %49 : vector<8x512xf32>
    %51 = vector.extract_strided_slice %50 {offsets = [0, 0], sizes = [8, 128], strides = [1, 1]} : vector<8x512xf32> to vector<8x128xf32>
    %52 = arith.negf %51 : vector<8x128xf32>
    %53 = math.exp %52 : vector<8x128xf32>
    %cst_25 = arith.constant 1.000000e+00 : f32
    %54 = vector.broadcast %cst_25 : f32 to vector<8x128xf32>
    %55 = arith.addf %54, %53 : vector<8x128xf32>
    %56 = arith.divf %54, %55 : vector<8x128xf32>
    %57 = vector.extract_strided_slice %50 {offsets = [0, 128], sizes = [8, 128], strides = [1, 1]} : vector<8x512xf32> to vector<8x128xf32>
    %58 = arith.negf %57 : vector<8x128xf32>
    %59 = math.exp %58 : vector<8x128xf32>
    %cst_26 = arith.constant 1.000000e+00 : f32
    %60 = vector.broadcast %cst_26 : f32 to vector<8x128xf32>
    %61 = arith.addf %60, %59 : vector<8x128xf32>
    %62 = arith.divf %60, %61 : vector<8x128xf32>
    %63 = vector.extract_strided_slice %50 {offsets = [0, 256], sizes = [8, 128], strides = [1, 1]} : vector<8x512xf32> to vector<8x128xf32>
    %64 = math.tanh %63 : vector<8x128xf32>
    %65 = vector.extract_strided_slice %50 {offsets = [0, 384], sizes = [8, 128], strides = [1, 1]} : vector<8x512xf32> to vector<8x128xf32>
    %66 = arith.negf %65 : vector<8x128xf32>
    %67 = math.exp %66 : vector<8x128xf32>
    %cst_27 = arith.constant 1.000000e+00 : f32
    %68 = vector.broadcast %cst_27 : f32 to vector<8x128xf32>
    %69 = arith.addf %68, %67 : vector<8x128xf32>
    %70 = arith.divf %68, %69 : vector<8x128xf32>
    %71 = arith.mulf %62, %43 : vector<8x128xf32>
    %72 = arith.mulf %56, %64 : vector<8x128xf32>
    %73 = arith.addf %71, %72 : vector<8x128xf32>
    %74 = math.tanh %73 : vector<8x128xf32>
    %75 = arith.mulf %70, %74 : vector<8x128xf32>
    %c8_28 = arith.constant 8 : index
    %c0_29 = arith.constant 0 : index
    %76 = vector.load %arg8[%c8_28, %c0_29] : memref<64x128xf32, #tpu.memory_space<vmem>>, vector<8x128xf32>
    tpu.vector_store %arg8[%c8_28, %c0_29], %75 {strides = array<i32>} : memref<64x128xf32, #tpu.memory_space<vmem>>, vector<8x128xf32>,
    %c16 = arith.constant 16 : index
    %c0_30 = arith.constant 0 : index
    %77 = vector.load %arg9[%c16, %c0_30] : memref<64x512xf32, #tpu.memory_space<vmem>>, vector<8x512xf32>
    %78 = arith.truncf %75 : vector<8x128xf32> to vector<8x128xbf16>
    %cst_31 = arith.constant dense<0.000000e+00> : vector<8x512xf32>
    %79 = tpu.matmul %78, %14, %cst_31 {dimension_numbers = #tpu.dot_dimension_numbers<[1], [0], [0], [1], [0, 0, 1, 1], [], []>} : vector<8x128xbf16>, vector<128x512xbf16>, vector<8x512xf32> -> vector<8x512xf32>
    %80 = arith.addf %77, %79 : vector<8x512xf32>
    %81 = vector.extract_strided_slice %80 {offsets = [0, 0], sizes = [8, 128], strides = [1, 1]} : vector<8x512xf32> to vector<8x128xf32>
    %82 = arith.negf %81 : vector<8x128xf32>
    %83 = math.exp %82 : vector<8x128xf32>
    %cst_32 = arith.constant 1.000000e+00 : f32
    %84 = vector.broadcast %cst_32 : f32 to vector<8x128xf32>
    %85 = arith.addf %84, %83 : vector<8x128xf32>
    %86 = arith.divf %84, %85 : vector<8x128xf32>
    %87 = vector.extract_strided_slice %80 {offsets = [0, 128], sizes = [8, 128], strides = [1, 1]} : vector<8x512xf32> to vector<8x128xf32>
    %88 = arith.negf %87 : vector<8x128xf32>
    %89 = math.exp %88 : vector<8x128xf32>
    %cst_33 = arith.constant 1.000000e+00 : f32
    %90 = vector.broadcast %cst_33 : f32 to vector<8x128xf32>
    %91 = arith.addf %90, %89 : vector<8x128xf32>
    %92 = arith.divf %90, %91 : vector<8x128xf32>
    %93 = vector.extract_strided_slice %80 {offsets = [0, 256], sizes = [8, 128], strides = [1, 1]} : vector<8x512xf32> to vector<8x128xf32>
    %94 = math.tanh %93 : vector<8x128xf32>
    %95 = vector.extract_strided_slice %80 {offsets = [0, 384], sizes = [8, 128], strides = [1, 1]} : vector<8x512xf32> to vector<8x128xf32>
    %96 = arith.negf %95 : vector<8x128xf32>
    %97 = math.exp %96 : vector<8x128xf32>
    %cst_34 = arith.constant 1.000000e+00 : f32
    %98 = vector.broadcast %cst_34 : f32 to vector<8x128xf32>
    %99 = arith.addf %98, %97 : vector<8x128xf32>
    %100 = arith.divf %98, %99 : vector<8x128xf32>
    %101 = arith.mulf %92, %73 : vector<8x128xf32>
    %102 = arith.mulf %86, %94 : vector<8x128xf32>
    %103 = arith.addf %101, %102 : vector<8x128xf32>
    %104 = math.tanh %103 : vector<8x128xf32>
    %105 = arith.mulf %100, %104 : vector<8x128xf32>
    %c16_35 = arith.constant 16 : index
    %c0_36 = arith.constant 0 : index
    %106 = vector.load %arg8[%c16_35, %c0_36] : memref<64x128xf32, #tpu.memory_space<vmem>>, vector<8x128xf32>
    tpu.vector_store %arg8[%c16_35, %c0_36], %105 {strides = array<i32>} : memref<64x128xf32, #tpu.memory_space<vmem>>, vector<8x128xf32>,
    %c24 = arith.constant 24 : index
    %c0_37 = arith.constant 0 : index
    %107 = vector.load %arg9[%c24, %c0_37] : memref<64x512xf32, #tpu.memory_space<vmem>>, vector<8x512xf32>
    %108 = arith.truncf %105 : vector<8x128xf32> to vector<8x128xbf16>
    %cst_38 = arith.constant dense<0.000000e+00> : vector<8x512xf32>
    %109 = tpu.matmul %108, %14, %cst_38 {dimension_numbers = #tpu.dot_dimension_numbers<[1], [0], [0], [1], [0, 0, 1, 1], [], []>} : vector<8x128xbf16>, vector<128x512xbf16>, vector<8x512xf32> -> vector<8x512xf32>
    %110 = arith.addf %107, %109 : vector<8x512xf32>
    %111 = vector.extract_strided_slice %110 {offsets = [0, 0], sizes = [8, 128], strides = [1, 1]} : vector<8x512xf32> to vector<8x128xf32>
    %112 = arith.negf %111 : vector<8x128xf32>
    %113 = math.exp %112 : vector<8x128xf32>
    %cst_39 = arith.constant 1.000000e+00 : f32
    %114 = vector.broadcast %cst_39 : f32 to vector<8x128xf32>
    %115 = arith.addf %114, %113 : vector<8x128xf32>
    %116 = arith.divf %114, %115 : vector<8x128xf32>
    %117 = vector.extract_strided_slice %110 {offsets = [0, 128], sizes = [8, 128], strides = [1, 1]} : vector<8x512xf32> to vector<8x128xf32>
    %118 = arith.negf %117 : vector<8x128xf32>
    %119 = math.exp %118 : vector<8x128xf32>
    %cst_40 = arith.constant 1.000000e+00 : f32
    %120 = vector.broadcast %cst_40 : f32 to vector<8x128xf32>
    %121 = arith.addf %120, %119 : vector<8x128xf32>
    %122 = arith.divf %120, %121 : vector<8x128xf32>
    %123 = vector.extract_strided_slice %110 {offsets = [0, 256], sizes = [8, 128], strides = [1, 1]} : vector<8x512xf32> to vector<8x128xf32>
    %124 = math.tanh %123 : vector<8x128xf32>
    %125 = vector.extract_strided_slice %110 {offsets = [0, 384], sizes = [8, 128], strides = [1, 1]} : vector<8x512xf32> to vector<8x128xf32>
    %126 = arith.negf %125 : vector<8x128xf32>
    %127 = math.exp %126 : vector<8x128xf32>
    %cst_41 = arith.constant 1.000000e+00 : f32
    %128 = vector.broadcast %cst_41 : f32 to vector<8x128xf32>
    %129 = arith.addf %128, %127 : vector<8x128xf32>
    %130 = arith.divf %128, %129 : vector<8x128xf32>
    %131 = arith.mulf %122, %103 : vector<8x128xf32>
    %132 = arith.mulf %116, %124 : vector<8x128xf32>
    %133 = arith.addf %131, %132 : vector<8x128xf32>
    %134 = math.tanh %133 : vector<8x128xf32>
    %135 = arith.mulf %130, %134 : vector<8x128xf32>
    %c24_42 = arith.constant 24 : index
    %c0_43 = arith.constant 0 : index
    %136 = vector.load %arg8[%c24_42, %c0_43] : memref<64x128xf32, #tpu.memory_space<vmem>>, vector<8x128xf32>
    tpu.vector_store %arg8[%c24_42, %c0_43], %135 {strides = array<i32>} : memref<64x128xf32, #tpu.memory_space<vmem>>, vector<8x128xf32>,
    %c32 = arith.constant 32 : index
    %c0_44 = arith.constant 0 : index
    %137 = vector.load %arg9[%c32, %c0_44] : memref<64x512xf32, #tpu.memory_space<vmem>>, vector<8x512xf32>
    %138 = arith.truncf %135 : vector<8x128xf32> to vector<8x128xbf16>
    %cst_45 = arith.constant dense<0.000000e+00> : vector<8x512xf32>
    %139 = tpu.matmul %138, %14, %cst_45 {dimension_numbers = #tpu.dot_dimension_numbers<[1], [0], [0], [1], [0, 0, 1, 1], [], []>} : vector<8x128xbf16>, vector<128x512xbf16>, vector<8x512xf32> -> vector<8x512xf32>
    %140 = arith.addf %137, %139 : vector<8x512xf32>
    %141 = vector.extract_strided_slice %140 {offsets = [0, 0], sizes = [8, 128], strides = [1, 1]} : vector<8x512xf32> to vector<8x128xf32>
    %142 = arith.negf %141 : vector<8x128xf32>
    %143 = math.exp %142 : vector<8x128xf32>
    %cst_46 = arith.constant 1.000000e+00 : f32
    %144 = vector.broadcast %cst_46 : f32 to vector<8x128xf32>
    %145 = arith.addf %144, %143 : vector<8x128xf32>
    %146 = arith.divf %144, %145 : vector<8x128xf32>
    %147 = vector.extract_strided_slice %140 {offsets = [0, 128], sizes = [8, 128], strides = [1, 1]} : vector<8x512xf32> to vector<8x128xf32>
    %148 = arith.negf %147 : vector<8x128xf32>
    %149 = math.exp %148 : vector<8x128xf32>
    %cst_47 = arith.constant 1.000000e+00 : f32
    %150 = vector.broadcast %cst_47 : f32 to vector<8x128xf32>
    %151 = arith.addf %150, %149 : vector<8x128xf32>
    %152 = arith.divf %150, %151 : vector<8x128xf32>
    %153 = vector.extract_strided_slice %140 {offsets = [0, 256], sizes = [8, 128], strides = [1, 1]} : vector<8x512xf32> to vector<8x128xf32>
    %154 = math.tanh %153 : vector<8x128xf32>
    %155 = vector.extract_strided_slice %140 {offsets = [0, 384], sizes = [8, 128], strides = [1, 1]} : vector<8x512xf32> to vector<8x128xf32>
    %156 = arith.negf %155 : vector<8x128xf32>
    %157 = math.exp %156 : vector<8x128xf32>
    %cst_48 = arith.constant 1.000000e+00 : f32
    %158 = vector.broadcast %cst_48 : f32 to vector<8x128xf32>
    %159 = arith.addf %158, %157 : vector<8x128xf32>
    %160 = arith.divf %158, %159 : vector<8x128xf32>
    %161 = arith.mulf %152, %133 : vector<8x128xf32>
    %162 = arith.mulf %146, %154 : vector<8x128xf32>
    %163 = arith.addf %161, %162 : vector<8x128xf32>
    %164 = math.tanh %163 : vector<8x128xf32>
    %165 = arith.mulf %160, %164 : vector<8x128xf32>
    %c32_49 = arith.constant 32 : index
    %c0_50 = arith.constant 0 : index
    %166 = vector.load %arg8[%c32_49, %c0_50] : memref<64x128xf32, #tpu.memory_space<vmem>>, vector<8x128xf32>
    tpu.vector_store %arg8[%c32_49, %c0_50], %165 {strides = array<i32>} : memref<64x128xf32, #tpu.memory_space<vmem>>, vector<8x128xf32>,
    %c40 = arith.constant 40 : index
    %c0_51 = arith.constant 0 : index
    %167 = vector.load %arg9[%c40, %c0_51] : memref<64x512xf32, #tpu.memory_space<vmem>>, vector<8x512xf32>
    %168 = arith.truncf %165 : vector<8x128xf32> to vector<8x128xbf16>
    %cst_52 = arith.constant dense<0.000000e+00> : vector<8x512xf32>
    %169 = tpu.matmul %168, %14, %cst_52 {dimension_numbers = #tpu.dot_dimension_numbers<[1], [0], [0], [1], [0, 0, 1, 1], [], []>} : vector<8x128xbf16>, vector<128x512xbf16>, vector<8x512xf32> -> vector<8x512xf32>
    %170 = arith.addf %167, %169 : vector<8x512xf32>
    %171 = vector.extract_strided_slice %170 {offsets = [0, 0], sizes = [8, 128], strides = [1, 1]} : vector<8x512xf32> to vector<8x128xf32>
    %172 = arith.negf %171 : vector<8x128xf32>
    %173 = math.exp %172 : vector<8x128xf32>
    %cst_53 = arith.constant 1.000000e+00 : f32
    %174 = vector.broadcast %cst_53 : f32 to vector<8x128xf32>
    %175 = arith.addf %174, %173 : vector<8x128xf32>
    %176 = arith.divf %174, %175 : vector<8x128xf32>
    %177 = vector.extract_strided_slice %170 {offsets = [0, 128], sizes = [8, 128], strides = [1, 1]} : vector<8x512xf32> to vector<8x128xf32>
    %178 = arith.negf %177 : vector<8x128xf32>
    %179 = math.exp %178 : vector<8x128xf32>
    %cst_54 = arith.constant 1.000000e+00 : f32
    %180 = vector.broadcast %cst_54 : f32 to vector<8x128xf32>
    %181 = arith.addf %180, %179 : vector<8x128xf32>
    %182 = arith.divf %180, %181 : vector<8x128xf32>
    %183 = vector.extract_strided_slice %170 {offsets = [0, 256], sizes = [8, 128], strides = [1, 1]} : vector<8x512xf32> to vector<8x128xf32>
    %184 = math.tanh %183 : vector<8x128xf32>
    %185 = vector.extract_strided_slice %170 {offsets = [0, 384], sizes = [8, 128], strides = [1, 1]} : vector<8x512xf32> to vector<8x128xf32>
    %186 = arith.negf %185 : vector<8x128xf32>
    %187 = math.exp %186 : vector<8x128xf32>
    %cst_55 = arith.constant 1.000000e+00 : f32
    %188 = vector.broadcast %cst_55 : f32 to vector<8x128xf32>
    %189 = arith.addf %188, %187 : vector<8x128xf32>
    %190 = arith.divf %188, %189 : vector<8x128xf32>
    %191 = arith.mulf %182, %163 : vector<8x128xf32>
    %192 = arith.mulf %176, %184 : vector<8x128xf32>
    %193 = arith.addf %191, %192 : vector<8x128xf32>
    %194 = math.tanh %193 : vector<8x128xf32>
    %195 = arith.mulf %190, %194 : vector<8x128xf32>
    %c40_56 = arith.constant 40 : index
    %c0_57 = arith.constant 0 : index
    %196 = vector.load %arg8[%c40_56, %c0_57] : memref<64x128xf32, #tpu.memory_space<vmem>>, vector<8x128xf32>
    tpu.vector_store %arg8[%c40_56, %c0_57], %195 {strides = array<i32>} : memref<64x128xf32, #tpu.memory_space<vmem>>, vector<8x128xf32>,
    %c48 = arith.constant 48 : index
    %c0_58 = arith.constant 0 : index
    %197 = vector.load %arg9[%c48, %c0_58] : memref<64x512xf32, #tpu.memory_space<vmem>>, vector<8x512xf32>
    %198 = arith.truncf %195 : vector<8x128xf32> to vector<8x128xbf16>
    %cst_59 = arith.constant dense<0.000000e+00> : vector<8x512xf32>
    %199 = tpu.matmul %198, %14, %cst_59 {dimension_numbers = #tpu.dot_dimension_numbers<[1], [0], [0], [1], [0, 0, 1, 1], [], []>} : vector<8x128xbf16>, vector<128x512xbf16>, vector<8x512xf32> -> vector<8x512xf32>
    %200 = arith.addf %197, %199 : vector<8x512xf32>
    %201 = vector.extract_strided_slice %200 {offsets = [0, 0], sizes = [8, 128], strides = [1, 1]} : vector<8x512xf32> to vector<8x128xf32>
    %202 = arith.negf %201 : vector<8x128xf32>
    %203 = math.exp %202 : vector<8x128xf32>
    %cst_60 = arith.constant 1.000000e+00 : f32
    %204 = vector.broadcast %cst_60 : f32 to vector<8x128xf32>
    %205 = arith.addf %204, %203 : vector<8x128xf32>
    %206 = arith.divf %204, %205 : vector<8x128xf32>
    %207 = vector.extract_strided_slice %200 {offsets = [0, 128], sizes = [8, 128], strides = [1, 1]} : vector<8x512xf32> to vector<8x128xf32>
    %208 = arith.negf %207 : vector<8x128xf32>
    %209 = math.exp %208 : vector<8x128xf32>
    %cst_61 = arith.constant 1.000000e+00 : f32
    %210 = vector.broadcast %cst_61 : f32 to vector<8x128xf32>
    %211 = arith.addf %210, %209 : vector<8x128xf32>
    %212 = arith.divf %210, %211 : vector<8x128xf32>
    %213 = vector.extract_strided_slice %200 {offsets = [0, 256], sizes = [8, 128], strides = [1, 1]} : vector<8x512xf32> to vector<8x128xf32>
    %214 = math.tanh %213 : vector<8x128xf32>
    %215 = vector.extract_strided_slice %200 {offsets = [0, 384], sizes = [8, 128], strides = [1, 1]} : vector<8x512xf32> to vector<8x128xf32>
    %216 = arith.negf %215 : vector<8x128xf32>
    %217 = math.exp %216 : vector<8x128xf32>
    %cst_62 = arith.constant 1.000000e+00 : f32
    %218 = vector.broadcast %cst_62 : f32 to vector<8x128xf32>
    %219 = arith.addf %218, %217 : vector<8x128xf32>
    %220 = arith.divf %218, %219 : vector<8x128xf32>
    %221 = arith.mulf %212, %193 : vector<8x128xf32>
    %222 = arith.mulf %206, %214 : vector<8x128xf32>
    %223 = arith.addf %221, %222 : vector<8x128xf32>
    %224 = math.tanh %223 : vector<8x128xf32>
    %225 = arith.mulf %220, %224 : vector<8x128xf32>
    %c48_63 = arith.constant 48 : index
    %c0_64 = arith.constant 0 : index
    %226 = vector.load %arg8[%c48_63, %c0_64] : memref<64x128xf32, #tpu.memory_space<vmem>>, vector<8x128xf32>
    tpu.vector_store %arg8[%c48_63, %c0_64], %225 {strides = array<i32>} : memref<64x128xf32, #tpu.memory_space<vmem>>, vector<8x128xf32>,
    %c56 = arith.constant 56 : index
    %c0_65 = arith.constant 0 : index
    %227 = vector.load %arg9[%c56, %c0_65] : memref<64x512xf32, #tpu.memory_space<vmem>>, vector<8x512xf32>
    %228 = arith.truncf %225 : vector<8x128xf32> to vector<8x128xbf16>
    %cst_66 = arith.constant dense<0.000000e+00> : vector<8x512xf32>
    %229 = tpu.matmul %228, %14, %cst_66 {dimension_numbers = #tpu.dot_dimension_numbers<[1], [0], [0], [1], [0, 0, 1, 1], [], []>} : vector<8x128xbf16>, vector<128x512xbf16>, vector<8x512xf32> -> vector<8x512xf32>
    %230 = arith.addf %227, %229 : vector<8x512xf32>
    %231 = vector.extract_strided_slice %230 {offsets = [0, 0], sizes = [8, 128], strides = [1, 1]} : vector<8x512xf32> to vector<8x128xf32>
    %232 = arith.negf %231 : vector<8x128xf32>
    %233 = math.exp %232 : vector<8x128xf32>
    %cst_67 = arith.constant 1.000000e+00 : f32
    %234 = vector.broadcast %cst_67 : f32 to vector<8x128xf32>
    %235 = arith.addf %234, %233 : vector<8x128xf32>
    %236 = arith.divf %234, %235 : vector<8x128xf32>
    %237 = vector.extract_strided_slice %230 {offsets = [0, 128], sizes = [8, 128], strides = [1, 1]} : vector<8x512xf32> to vector<8x128xf32>
    %238 = arith.negf %237 : vector<8x128xf32>
    %239 = math.exp %238 : vector<8x128xf32>
    %cst_68 = arith.constant 1.000000e+00 : f32
    %240 = vector.broadcast %cst_68 : f32 to vector<8x128xf32>
    %241 = arith.addf %240, %239 : vector<8x128xf32>
    %242 = arith.divf %240, %241 : vector<8x128xf32>
    %243 = vector.extract_strided_slice %230 {offsets = [0, 256], sizes = [8, 128], strides = [1, 1]} : vector<8x512xf32> to vector<8x128xf32>
    %244 = math.tanh %243 : vector<8x128xf32>
    %245 = vector.extract_strided_slice %230 {offsets = [0, 384], sizes = [8, 128], strides = [1, 1]} : vector<8x512xf32> to vector<8x128xf32>
    %246 = arith.negf %245 : vector<8x128xf32>
    %247 = math.exp %246 : vector<8x128xf32>
    %cst_69 = arith.constant 1.000000e+00 : f32
    %248 = vector.broadcast %cst_69 : f32 to vector<8x128xf32>
    %249 = arith.addf %248, %247 : vector<8x128xf32>
    %250 = arith.divf %248, %249 : vector<8x128xf32>
    %251 = arith.mulf %242, %223 : vector<8x128xf32>
    %252 = arith.mulf %236, %244 : vector<8x128xf32>
    %253 = arith.addf %251, %252 : vector<8x128xf32>
    %254 = math.tanh %253 : vector<8x128xf32>
    %255 = arith.mulf %250, %254 : vector<8x128xf32>
    %c56_70 = arith.constant 56 : index
    %c0_71 = arith.constant 0 : index
    %256 = vector.load %arg8[%c56_70, %c0_71] : memref<64x128xf32, #tpu.memory_space<vmem>>, vector<8x128xf32>
    tpu.vector_store %arg8[%c56_70, %c0_71], %255 {strides = array<i32>} : memref<64x128xf32, #tpu.memory_space<vmem>>, vector<8x128xf32>,
    %c3_i32 = arith.constant 3 : i32
    %257 = arith.cmpi eq, %arg0, %c3_i32 : i32
    %258 = arith.extui %257 : i1 to i32
    %c0_i32_72 = arith.constant 0 : i32
    %259 = arith.cmpi ne, %258, %c0_i32_72 : i32
    scf.if %259 {
      %c0_73 = arith.constant 0 : index
      %c0_74 = arith.constant 0 : index
      %260 = vector.load %arg5[%c0_73, %c0_74] : memref<1x128xf32, #tpu.memory_space<vmem>>, vector<1x128xf32>
      %261 = vector.broadcast %260 : vector<1x128xf32> to vector<8x128xf32>
      %262 = arith.mulf %255, %261 : vector<8x128xf32>
      %cst_75 = arith.constant dense<0.000000e+00> : vector<8xf32>
      %263 = vector.multi_reduction <add>, %262, %cst_75 [1] : vector<8x128xf32> to vector<8xf32>
      %264 = vector.shape_cast %263 : vector<8xf32> to vector<8x1xf32>
      %c0_76 = arith.constant 0 : index
      %c0_77 = arith.constant 0 : index
      %265 = vector.load %arg6[%c0_76, %c0_77] : memref<1x1xf32, #tpu.memory_space<vmem>>, vector<1x1xf32>
      %266 = vector.broadcast %265 : vector<1x1xf32> to vector<8x1xf32>
      %267 = arith.addf %264, %266 : vector<8x1xf32>
      %268 = vector.shape_cast %267 : vector<8x1xf32> to vector<8x1xf32>
      %269 = vector.broadcast %268 : vector<8x1xf32> to vector<8x128xf32>
      %c0_78 = arith.constant 0 : index
      %c0_79 = arith.constant 0 : index
      %270 = vector.load %arg7[%c0_78, %c0_79] : memref<8x128xf32, #tpu.memory_space<vmem>>, vector<8x128xf32>
      tpu.vector_store %arg7[%c0_78, %c0_79], %269 {strides = array<i32>} : memref<8x128xf32, #tpu.memory_space<vmem>>, vector<8x128xf32>,
    } else {
    }
    return
  }
  func.func @transform_0(%arg0: i32) -> (i32, i32) {
    %c0_i32 = arith.constant 0 : i32
    %c0_i32_0 = arith.constant 0 : i32
    %c0_i32_1 = arith.constant 0 : i32
    return %c0_i32, %c0_i32_0 : i32, i32
  }
  func.func @transform_1(%arg0: i32) -> (i32, i32, i32) {
    %c0_i32 = arith.constant 0 : i32
    %c0_i32_0 = arith.constant 0 : i32
    %c0_i32_1 = arith.constant 0 : i32
    return %arg0, %c0_i32, %c0_i32_0 : i32, i32, i32
  }
  func.func @transform_2(%arg0: i32) -> (i32, i32, i32) {
    %c0_i32 = arith.constant 0 : i32
    %c0_i32_0 = arith.constant 0 : i32
    %c0_i32_1 = arith.constant 0 : i32
    return %arg0, %c0_i32, %c0_i32_0 : i32, i32, i32
  }
  func.func @transform_3(%arg0: i32) -> (i32, i32, i32) {
    %c0_i32 = arith.constant 0 : i32
    %c0_i32_0 = arith.constant 0 : i32
    %c0_i32_1 = arith.constant 0 : i32
    return %arg0, %c0_i32, %c0_i32_0 : i32, i32, i32
  }
  func.func @transform_4(%arg0: i32) -> (i32, i32) {
    %c0_i32 = arith.constant 0 : i32
    %c0_i32_0 = arith.constant 0 : i32
    %c0_i32_1 = arith.constant 0 : i32
    return %c0_i32, %c0_i32_0 : i32, i32
  }
  func.func @transform_5(%arg0: i32) -> (i32, i32) {
    %c0_i32 = arith.constant 0 : i32
    %c0_i32_0 = arith.constant 0 : i32
    %c0_i32_1 = arith.constant 0 : i32
    return %c0_i32, %c0_i32_0 : i32, i32
  }
  func.func @transform_6(%arg0: i32) -> (i32, i32) {
    %c0_i32 = arith.constant 0 : i32
    %c0_i32_0 = arith.constant 0 : i32
    %c0_i32_1 = arith.constant 0 : i32
    return %c0_i32, %c0_i32_0 : i32, i32
  }
}

</mosaic_0001>

<bundles_post_ra>
// kernel: tpu_custom_call.1
= control target key start
LH: loop header
LB: loop body
LE: loop exit
PB: predicated region body
PF: predicated region fallthrough
CT: control target
= control target key end

     0   :  { %s3577_s0 = inlined_call_operand.hbm [shape: f32[64,128], index: 0, kind: input, shape index: {}]   ;;  %s3578_s1 = inlined_call_operand.hbm [shape: bf16[4,128,512], index: 1, kind: input, shape index: {}]   ;;  %s3579_s2 = inlined_call_operand.hbm [shape: bf16[4,128,512], index: 2, kind: input, shape index: {}]   ;;  %s3580_s3 = inlined_call_operand.hbm [shape: f32[4,1,512], index: 3, kind: input, shape index: {}]   ;;  %s3581_s4 = inlined_call_operand.vmem [shape: f32[1,128], index: 4, kind: input, shape index: {}]   ;;  %s3582_s5 = inlined_call_operand.<no memory space> [shape: f32[1,1], index: 5, kind: input, shape index: {}]   ;;  %s3583_s6 = inlined_call_operand.hbm [shape: f32[8,128], index: 6, kind: output, shape index: {}]  }
   0x1   :  { %v11_v0 = vstv %s3582_s5 }
   0x2   :  { %12 = vst [vmem:[#allocation4] sm:$0x1] %v11_v0 }
   0x3   :  { %13 = vsyncpa [#allocation6], 0 }
   0x4   :  { %14 = vsyncpa [#allocation9], 0 }
   0x5   :  { %16 = vsyncpa [#allocation9 + $0x1], 0 }
   0x6   :  { %17 = vsyncpa [#allocation12], 0 }
   0x7   :  { %19 = vsyncpa [#allocation12 + $0x1], 0 }
   0x8   :  { %20 = vsyncpa [#allocation7], 0  ;;  %s2712_s23 = smov 0   ;;  %s2714_s24 = smov 0  }
   0x9   :  { %s2716_s25 = smov 0   ;;  %s2718_s26 = smov 0  }
   0xa LB: > { %s2733_s5 = sadd.s32 1, %s2661_s26   ;;  %s54_s27 = sadd.s32 1, %s2657_s25  ;;  %s2661_s26 = sphi %s2718_s26, %s3645_s26   ;;  %s2657_s25 = sphi %s2716_s25, %s3644_s25   ;;  %s2653_s24 = sphi %s2714_s24, %s3643_s24   ;;  %s2649_s23 = sphi %s2712_s23, %s3642_s23  }
   0xb   : > { %s51_s28 = ssub.s32 %s2661_s26, %s2733_s5  ;;  %p61_p0 = scmp.ne.s32.totalorder %s2657_s25, %s2653_s24 }
   0xc   : > { %p52_p1 = scmp.eq.s32.totalorder %s51_s28, 0  ;;  %p62_p2 = scmp.eq.s32.totalorder %s2661_s26, 0 }
   0xd   : > { %p2180_p3 = scmp.lt.s32.totalorder %s2661_s26, 4  ;;  %s225_s30 = sand.u32 1, %s2661_s26  }
   0xe   : > { %s2743_s29 = scalar_select %p52_p1, %s2657_s25, %s54_s27  }
   0xf   : > { %p63_p4 = por %p62_p2, %p61_p0  ;;  %s2747_s7 = sand.u32 1, %s2657_s25  }
  0x10   : > { %s2038_s8 = sshll.u32 %s2747_s7, 8  ;;  %s2148_s9 = sshll.u32 %s2661_s26, 12 }
  0x11   : > { %s2756_s12 = scalar_lea.hbm %s3578_s1, %s2148_s9  ;;  %s229_s13 = scalar_lea.vmem [#allocation8], %s2038_s8 }
  0x12   : > { %s236_s14 = sshll.u32 %s229_s13, 4  ;;  %p2760_p5 = pnand %p2180_p3, %p63_p4  ;;  %s2764_s14 = int_to_ptr.vmem [resolvable:$true] %s236_s14 }
  0x13   : > { %s2766_s16 = scalar_lea.sflag [#allocation9], %s225_s30  ;;  %s2481_s17 = scalar_lea.hbm %s2756_s12, 4096 }
  0x14   : > { %p2482_p6 = scmp.ne.s32.totalorder %s2756_s12, %s2481_s17  ;;  %p2772_p7 = pneg %p2760_p5 }
  0x15   : > { %s2486_s21 = scalar_lea.hbm %s3578_s1, 16384  ;;  %p2487_p10 = scmp.lt.s32.totalorder %s2756_s12, %s3578_s1 }
  0x16   : > { %p2484_p8 = pnand %p2772_p7, %p2482_p6  ;;  %p2488_p11 = scmp.lt.s32.totalorder %s2486_s21, %s2481_s17 }
  0x18   : > { %p2485_p9 = pneg %p2484_p8  ;;  %p2489_p12 = por %p2488_p11, %p2487_p10 }
  0x1a   : > { %p2490_p13 = pnand %p2489_p12, %p2485_p9 }
  0x1c   : > { %2493 = shalt.err (!%p2490_p13)
}
  0x1d   : > { %s2494_s28 = scalar_lea.vmem %s2764_s14, 4096  ;;  %s2663_s30 = smov [#allocation8]  }
  0x1e   : > { %p2495_p0 = scmp.ne.s32.totalorder %s2764_s14, %s2494_s28  ;;  %s2499_s10 = sshll.u32 %s2663_s30, 4  ;;  %s2500_s10 = int_to_ptr.vmem [resolvable:$false] %s2499_s10 }
  0x1f   : > { %s2501_s11 = scalar_lea.vmem %s2500_s10, 8192  ;;  %p2502_p3 = scmp.lt.s32.totalorder %s2764_s14, %s2500_s10 }
  0x20   : > { %p2497_p1 = pnand %p2495_p0, %p2772_p7  ;;  %p2503_p4 = scmp.lt.s32.totalorder %s2501_s11, %s2494_s28 }
  0x22   : > { %p2498_p2 = pneg %p2497_p1  ;;  %p2504_p6 = por %p2503_p4, %p2502_p3 }
  0x24   : > { %p2505_p8 = pnand %p2504_p6, %p2498_p2 }
  0x26   : > { %2508 = shalt.err (!%p2505_p8)
}
  0x27   : > { %s2664_s13 = smov 256   ;;  %s2665_s17 = smov 16  }
  0x28   : > { %2172 = dma.hbm_to_vmem [thread:$0]  (!%p2760_p5), %s2756_s12, 4096, %s2764_s14, %s2766_s16, %s2664_s13, %s2664_s13, %s2665_s17  }
  0x29   : > { %s2803_s21 = scalar_lea.hbm %s3579_s2, %s2148_s9  ;;  %s250_s22 = scalar_lea.vmem [#allocation10], %s2038_s8 }
  0x2a   : > { %s257_s27 = sshll.u32 %s250_s22, 4  ;;  %s2810_s28 = sadd.s32 4294967295, %s2661_s26   ;;  %s2807_s27 = int_to_ptr.vmem [resolvable:$true] %s257_s27 }
  0x2b   : > { %p67_p9 = scmp.ne.s32.totalorder %s2653_s24, %s2649_s23  ;;  %p3584_p10 = scmp.eq.s32.totalorder %s2810_s28, 0 }
  0x2c   : > { %p2035_p11 = scmp.ge.s32.totalorder %s2661_s26, 1  ;;  %p193_p12 = scmp.lt.s32.totalorder %s2661_s26, 5 }
  0x2d   : > { %p2820_p0 = por %p3584_p10, %p67_p9  ;;  %s2666_s12 = smov [#allocation5]  }
  0x2e   : > { %p2824_p1 = pnand %p2035_p11, %p193_p12  ;;  %s205_s14 = sshll.u32 %s2666_s12, 4  ;;  %s2828_s14 = int_to_ptr.vmem [resolvable:$true] %s205_s14 }
  0x2f   : > { %s3592_s9 = scalar_select %p2820_p0, 1, 0 }
  0x30   : > { %s3593_s8 = scalar_select %p2824_p1, 1, 0 }
  0x31   : > { %s2509_s23 = scalar_lea.hbm %s2803_s21, 4096  ;;  %s2514_s11 = scalar_lea.hbm %s3579_s2, 16384 }
  0x32   : > { %p2510_p3 = scmp.ne.s32.totalorder %s2803_s21, %s2509_s23  ;;  %p2515_p8 = scmp.lt.s32.totalorder %s2803_s21, %s3579_s2 }
  0x33   : > { %p2516_p9 = scmp.lt.s32.totalorder %s2514_s11, %s2509_s23 }
  0x34   : > { %p2512_p4 = pnand %p2510_p3, %p2772_p7 }
  0x35   : > { %p2517_p11 = por %p2516_p9, %p2515_p8 }
  0x36   : > { %p2513_p6 = pneg %p2512_p4 }
  0x38   : > { %p2518_p12 = pnand %p2517_p11, %p2513_p6 }
  0x3a   : > { %2521 = shalt.err (!%p2518_p12)
}
  0x3b   : > { %s2522_s22 = scalar_lea.vmem %s2807_s27, 4096  ;;  %s2667_s12 = smov [#allocation10]  }
  0x3c   : > { %p2523_p13 = scmp.ne.s32.totalorder %s2807_s27, %s2522_s22  ;;  %s2527_s30 = sshll.u32 %s2667_s12, 4  ;;  %s2528_s30 = int_to_ptr.vmem [resolvable:$false] %s2527_s30 }
  0x3d   : > { %s2529_s10 = scalar_lea.vmem %s2528_s30, 8192  ;;  %p2530_p2 = scmp.lt.s32.totalorder %s2807_s27, %s2528_s30 }
  0x3e   : > { %p2525_p3 = pnand %p2523_p13, %p2772_p7  ;;  %p2531_p10 = scmp.lt.s32.totalorder %s2529_s10, %s2522_s22 }
  0x40   : > { %p2526_p4 = pneg %p2525_p3  ;;  %p2532_p0 = por %p2531_p10, %p2530_p2 }
  0x42   : > { %p2533_p1 = pnand %p2532_p0, %p2526_p4 }
  0x44   : > { %2536 = shalt.err (!%p2533_p1)
}
  0x45   : > { %2175 = dma.hbm_to_vmem [thread:$0]  (!%p2760_p5), %s2803_s21, 4096, %s2807_s27, %s2766_s16, %s2664_s13, %s2664_s13, %s2665_s17  }
  0x46   : > { %p3594_p13 = scmp.eq.s32.totalorder %s2810_s28, 0  ;;  %p3595_p10 = scmp.ne.s32.totalorder %s3593_s8, 0 }
  0x47   : > { %s2044_s11 = sshll.u32 %s2747_s7, 2  ;;  %s2150_s19 = sshll.u32 %s2661_s26, 6 }
  0x48   : > { %p3596_p0 = pneg %p3595_p10  ;;  %s2548_s20 = scalar_lea.vmem %s2828_s14, 1024 }
  0x49   : > { %p2549_p6 = scmp.ne.s32.totalorder %s2828_s14, %s2548_s20  ;;  %p2556_p11 = scmp.lt.s32.totalorder %s2828_s14, %s2828_s14 }
  0x4a   : > { %p2861_p1 = pnand %p3596_p0, %p3594_p13  ;;  %p2557_p12 = scmp.lt.s32.totalorder %s2548_s20, %s2548_s20 }
  0x4c   : > { %p2539_p2 = pneg %p2861_p1  ;;  %p2558_p3 = por %p2557_p12, %p2556_p11 }
  0x4e   : > { %p2551_p8 = pnand %p2549_p6, %p2539_p2 }
  0x50   : > { %p2552_p9 = pneg %p2551_p8 }
  0x52   : > { %p2559_p4 = pnand %p2558_p3, %p2552_p9 }
  0x54   : > { %2562 = shalt.err (!%p2559_p4)
}
  0x55   : > { %s2668_s16 = smov 128   ;;  %s2669_s13 = smov 8  }
  0x56   : > { %2168 = dma.hbm_to_vmem [thread:$0]  (!%p2861_p1), %s3577_s0, 1024, %s2828_s14, [#allocation6], %s2668_s16, %s2668_s16, %s2669_s13  }
  0x57   : > { %s2882_s22 = scalar_lea.hbm %s3580_s3, %s2150_s19  ;;  %s271_s12 = scalar_lea.vmem [#allocation11], %s2044_s11 }
  0x58   : > { %s279_s30 = sshll.u32 %s271_s12, 4  ;;  %s268_s10 = scalar_lea.sflag [#allocation12], %s2747_s7  ;;  %s280_s30 = int_to_ptr.vmem [resolvable:$true] %s279_s30 }
  0x59   : > { %s2563_s20 = scalar_lea.hbm %s2882_s22, 64  ;;  %s2568_s14 = scalar_lea.hbm %s3580_s3, 256 }
  0x5a   : > { %p2564_p13 = scmp.ne.s32.totalorder %s2882_s22, %s2563_s20  ;;  %p2569_p1 = scmp.lt.s32.totalorder %s2882_s22, %s3580_s3 }
  0x5b   : > { %p2570_p6 = scmp.lt.s32.totalorder %s2568_s14, %s2563_s20 }
  0x5c   : > { %p2566_p0 = pnand %p2564_p13, %p2772_p7 }
  0x5d   : > { %p2571_p8 = por %p2570_p6, %p2569_p1 }
  0x5e   : > { %p2567_p2 = pneg %p2566_p0 }
  0x60   : > { %p2572_p9 = pnand %p2571_p8, %p2567_p2 }
  0x62   : > { %2575 = shalt.err (!%p2572_p9)
}
  0x63   : > { %s2576_s11 = scalar_lea.vmem %s280_s30, 64  ;;  %s2670_s7 = smov [#allocation11]  }
  0x64   : > { %p2577_p11 = scmp.ne.s32.totalorder %s280_s30, %s2576_s11  ;;  %s2581_s19 = sshll.u32 %s2670_s7, 4  ;;  %s2582_s19 = int_to_ptr.vmem [resolvable:$false] %s2581_s19 }
  0x65   : > { %s2583_s17 = scalar_lea.vmem %s2582_s19, 128  ;;  %p2584_p4 = scmp.lt.s32.totalorder %s280_s30, %s2582_s19 }
  0x66   : > { %p2579_p12 = pnand %p2577_p11, %p2772_p7  ;;  %p2585_p13 = scmp.lt.s32.totalorder %s2583_s17, %s2576_s11 }
  0x68   : > { %p2580_p3 = pneg %p2579_p12  ;;  %p2586_p0 = por %p2585_p13, %p2584_p4 }
  0x6a   : > { %p2587_p10 = pnand %p2586_p0, %p2580_p3 }
  0x6c   : > { %2590 = shalt.err (!%p2587_p10)
}
  0x6d   : > { %2178 = dma.hbm_to_vmem [thread:$0]  (!%p2760_p5), %s2882_s22, 64, %s280_s30, %s268_s10  }
  0x6e   : > { %p3598_p2 = scmp.ne.s32.totalorder %s3593_s8, 0 }
  0x70   : > { %288 = sbr.rel (%p3598_p2) target bundleno = 2496 (0x9c0), region = 44 }
  0x75   : > { %p3599_p1 = scmp.eq.s32.totalorder %s2810_s28, 0 }
  0x77   : > { %2632 = dma.done.wait (%p3599_p1), [#allocation6], 1024   ;;  %p3600_p7 = pmov %p3599_p1 }
  0x78   : > { %s294_s18 = sand.u32 1, %s2810_s28   ;;  %s296_s21 = sand.u32 1, %s2653_s24  }
  0x79   : > { %2634 = vsyncadd (%p3600_p7), [#allocation6], 4294966272  ;;  %s2049_s27 = sshll.u32 %s296_s21, 8  ;;  %s295_s12 = scalar_lea.sflag [#allocation9], %s294_s18 }
  0x7a   : > { %s2909_s20 = scalar_lea.vmem [#allocation8], %s2049_s27  ;;  %p3601_p10 = scmp.ne.s32.totalorder %s3592_s9, 0 }
  0x7c   : > { %2636 = dma.done.wait (%p3601_p10), %s295_s12, 8192  }
  0x7d   : > { %2638 = vsyncadd (%p3601_p10), %s295_s12, 4294959104  ;;  %s2051_s15 = sshll.u32 %s296_s21, 2  ;;  %s2915_s8 = scalar_lea.vmem [#allocation10], %s2049_s27 }
  0x7e   : > { %s313_s22 = scalar_lea.sflag [#allocation12], %s296_s21  ;;  %s2917_s30 = scalar_lea.vmem [#allocation11], %s2051_s15 }
  0x7f   : > { %2640 = dma.done.wait (%p3601_p10), %s313_s22, 64  }
  0x80   : > { %2642 = vsyncadd (%p3601_p10), %s313_s22, 4294967232  ;;  %p3602_p5 = scmp.ne.s32.totalorder %s2810_s28, 0 }
  0x82   : > { %354 = sbr.rel (%p3602_p5) target bundleno = 140 (0x8c), region = 64 }
  0x87   : > { %v355_v1 = vld [vmem:[#allocation5] sm:$0xff]  ;;  %v356_v2 = vld [vmem:[#allocation5 + $0x8] sm:$0xff]  ;;  %v357_v3 = vld [vmem:[#allocation5 + $0x10] sm:$0xff] }
  0x88   : > { %363 = vst [vmem:[#allocation2 + $0x30] sm:$0xff] %v355_v1  ;;  %364 = vst [vmem:[#allocation2] sm:$0xff] %v356_v2  ;;  %v358_v4 = vld [vmem:[#allocation5 + $0x18] sm:$0xff]  ;;  %v359_v5 = vld [vmem:[#allocation5 + $0x20] sm:$0xff] }
  0x89   : > { %365 = vst [vmem:[#allocation2 + $0x18] sm:$0xff] %v357_v3  ;;  %v360_v6 = vld [vmem:[#allocation5 + $0x28] sm:$0xff]  ;;  %366 = vst [vmem:[#allocation2 + $0x10] sm:$0xff] %v358_v4  ;;  %v361_v7 = vld [vmem:[#allocation5 + $0x30] sm:$0xff] }
  0x8a   : > { %367 = vst [vmem:[#allocation2 + $0x8] sm:$0xff] %v359_v5  ;;  %368 = vst [vmem:[#allocation2 + $0x20] sm:$0xff] %v360_v6  ;;  %v362_v8 = vld [vmem:[#allocation5 + $0x38] sm:$0xff] }
  0x8b   : > { %369 = vst [vmem:[#allocation2 + $0x28] sm:$0xff] %v361_v7  ;;  %370 = vst [vmem:[#allocation2 + $0x38] sm:$0xff] %v362_v8 }
  0x8c PF: > { %v2224_v9 = vld [vmem:[%s2909_s20 + $0xe4] ss:$16 sps:$4 sm:$0xff]   ;;  %v2226_v10 = vld [vmem:[%s2909_s20 + $0xec] ss:$16 sps:$4 sm:$0xff]   ;;  %v3588_v11 = vmov 0   ;;  %p2141_p6 = scmp.ne.s32.totalorder %s2810_s28, 3 }
  0x8d   : > { %629 = vmatprep.mubr.bf16.mxu0 %v3588_v11  ;;  %702 = vmatprep.mubr.bf16.mxu1 %v3588_v11  ;;  %v2228_v12 = vld [vmem:[%s2909_s20 + $0xe0] ss:$16 sps:$4 sm:$0xff]   ;;  %v2229_v13 = vld [vmem:[%s2909_s20 + $0xe8] ss:$16 sps:$4 sm:$0xff]   ;;  %v2230_v14 = vld [vmem:[%s2909_s20 + $0xc4] ss:$16 sps:$4 sm:$0xff]  }
  0x8e   : > { %597 = vmatprep.subr.bf16.mxu0 %v2224_v9  ;;  %670 = vmatprep.subr.bf16.mxu1 %v2226_v10  ;;  %v2232_v15 = vld [vmem:[%s2909_s20 + $0xcc] ss:$16 sps:$4 sm:$0xff]   ;;  %v2234_v16 = vld [vmem:[%s2909_s20 + $0xc0] ss:$16 sps:$4 sm:$0xff]   ;;  %v2235_v17 = vld [vmem:[%s2909_s20 + $0xc8] ss:$16 sps:$4 sm:$0xff]  }
  0x8f   : > { %598 = vmatpush1.bf16.msra.mxu0 %v2228_v12  ;;  %671 = vmatpush1.bf16.msra.mxu1 %v2229_v13  ;;  %v2236_v18 = vld [vmem:[%s2909_s20 + $0xa4] ss:$16 sps:$4 sm:$0xff]   ;;  %v2238_v19 = vld [vmem:[%s2909_s20 + $0xac] ss:$16 sps:$4 sm:$0xff]   ;;  %v2240_v20 = vld [vmem:[%s2909_s20 + $0xa0] ss:$16 sps:$4 sm:$0xff]  }
  0x90   : > { %599 = vmatprep.subr.bf16.mxu0 %v2230_v14  ;;  %672 = vmatprep.subr.bf16.mxu1 %v2232_v15  ;;  %v2241_v21 = vld [vmem:[%s2909_s20 + $0xa8] ss:$16 sps:$4 sm:$0xff]   ;;  %v2242_v22 = vld [vmem:[%s2909_s20 + $0x84] ss:$16 sps:$4 sm:$0xff]   ;;  %v2244_v23 = vld [vmem:[%s2909_s20 + $0x8c] ss:$16 sps:$4 sm:$0xff]  }
  0x91   : > { %v2246_v24 = vld [vmem:[%s2909_s20 + $0x80] ss:$16 sps:$4 sm:$0xff]   ;;  %v2247_v25 = vld [vmem:[%s2909_s20 + $0x88] ss:$16 sps:$4 sm:$0xff]   ;;  %v2248_v26 = vld [vmem:[%s2909_s20 + $0x64] ss:$16 sps:$4 sm:$0xff]  }
  0x92   : > { %v2250_v27 = vld [vmem:[%s2909_s20 + $0x6c] ss:$16 sps:$4 sm:$0xff]   ;;  %v2252_v28 = vld [vmem:[%s2909_s20 + $0x60] ss:$16 sps:$4 sm:$0xff]   ;;  %v2253_v29 = vld [vmem:[%s2909_s20 + $0x68] ss:$16 sps:$4 sm:$0xff]  }
  0x93   : > { %600 = vmatpush1.bf16.msra.mxu0 %v2234_v16  ;;  %673 = vmatpush1.bf16.msra.mxu1 %v2235_v17  ;;  %v2254_v30 = vld [vmem:[%s2909_s20 + $0x44] ss:$16 sps:$4 sm:$0xff]   ;;  %v2256_v31 = vld [vmem:[%s2909_s20 + $0x4c] ss:$16 sps:$4 sm:$0xff]   ;;  %v2258_v32 = vld [vmem:[%s2909_s20 + $0x40] ss:$16 sps:$4 sm:$0xff]  }
  0x94   : > { %601 = vmatprep.subr.bf16.mxu0 %v2236_v18  ;;  %674 = vmatprep.subr.bf16.mxu1 %v2238_v19  ;;  %v2259_v33 = vld [vmem:[%s2909_s20 + $0x48] ss:$16 sps:$4 sm:$0xff]   ;;  %v2260_v34 = vld [vmem:[%s2909_s20 + $0x24] ss:$16 sps:$4 sm:$0xff]   ;;  %v2262_v35 = vld [vmem:[%s2909_s20 + $0x2c] ss:$16 sps:$4 sm:$0xff]  }
  0x95   : > { %v2264_v36 = vld [vmem:[%s2909_s20 + $0x20] ss:$16 sps:$4 sm:$0xff]   ;;  %v2265_v37 = vld [vmem:[%s2909_s20 + $0x28] ss:$16 sps:$4 sm:$0xff]   ;;  %v2266_v38 = vld [vmem:[%s2909_s20 + $0x4] ss:$16 sps:$4 sm:$0xff]  }
  0x96   : > { %v2268_v39 = vld [vmem:[%s2909_s20 + $0xc] ss:$16 sps:$4 sm:$0xff]   ;;  %v2270_v40 = vld [vmem:[%s2909_s20] ss:$16 sps:$4 sm:$0xff]   ;;  %v2271_v41 = vld [vmem:[%s2909_s20 + $0x8] ss:$16 sps:$4 sm:$0xff]  }
  0x97   : > { %602 = vmatpush1.bf16.msra.mxu0 %v2240_v20  ;;  %675 = vmatpush1.bf16.msra.mxu1 %v2241_v21  ;;  %v371_v42 = vld [vmem:[#allocation2 + $0x30] sm:$0xff]  ;;  %v372_v43 = vld [vmem:[#allocation2] sm:$0xff]  ;;  %v2969_v48 = vld [vmem:[%s2915_s8 + $0xe8] ss:$16 sps:$4 sm:$0xff]  }
  0x98   : > { %603 = vmatprep.subr.bf16.mxu0 %v2242_v22  ;;  %676 = vmatprep.subr.bf16.mxu1 %v2244_v23  ;;  %v2960_v44 = vld [vmem:[%s2915_s8 + $0xe4] ss:$16 sps:$4 sm:$0xff]   ;;  %v2963_v45 = vld [vmem:[%s2915_s8 + $0xec] ss:$16 sps:$4 sm:$0xff]   ;;  %v379_v46 = vpack.c.bf16 %v372_v43, %v371_v42  ;;  %v2966_v47 = vld [vmem:[%s2915_s8 + $0xe0] ss:$16 sps:$4 sm:$0xff]   ;;  %v417_v23 = vlaneseq }
  0x99   : > { %v2974_v49 = vld [vmem:[%s2915_s8 + $0xc4] ss:$16 sps:$4 sm:$0xff]   ;;  %v2977_v50 = vld [vmem:[%s2915_s8 + $0xcc] ss:$16 sps:$4 sm:$0xff]   ;;  %v2980_v51 = vld [vmem:[%s2915_s8 + $0xc0] ss:$16 sps:$4 sm:$0xff]  }
  0x9a   : > { %v2983_v52 = vld [vmem:[%s2915_s8 + $0xc8] ss:$16 sps:$4 sm:$0xff]   ;;  %v374_v54 = vld [vmem:[#allocation2 + $0x10] sm:$0xff]  ;;  %v376_v1 = vld [vmem:[#allocation2 + $0x20] sm:$0xff] }
  0x9b   : > { %604 = vmatpush1.bf16.msra.mxu0 %v2246_v24  ;;  %677 = vmatpush1.bf16.msra.mxu1 %v2247_v25  ;;  %v373_v53 = vld [vmem:[#allocation2 + $0x18] sm:$0xff]  ;;  %v2998_v58 = vld [vmem:[%s2915_s8 + $0xa0] ss:$16 sps:$4 sm:$0xff]   ;;  %v375_v0 = vld [vmem:[#allocation2 + $0x8] sm:$0xff]  ;;  %v418_v24 = vshrl.u32 %v417_v23, 7 }
  0x9c   : > { %605 = vmatprep.subr.bf16.mxu0 %v2248_v26  ;;  %678 = vmatprep.subr.bf16.mxu1 %v2250_v27  ;;  %v2988_v55 = vld [vmem:[%s2915_s8 + $0xa4] ss:$16 sps:$4 sm:$0xff]   ;;  %v2993_v56 = vld [vmem:[%s2915_s8 + $0xac] ss:$16 sps:$4 sm:$0xff]   ;;  %v380_v57 = vpack.c.bf16 %v374_v54, %v373_v53  ;;  %v3001_v59 = vld [vmem:[%s2915_s8 + $0xa8] ss:$16 sps:$4 sm:$0xff]   ;;  %v381_v4 = vpack.c.bf16 %v376_v1, %v375_v0 }
  0x9d   : > { %v3006_v60 = vld [vmem:[%s2915_s8 + $0x84] ss:$16 sps:$4 sm:$0xff]   ;;  %v3011_v61 = vld [vmem:[%s2915_s8 + $0x8c] ss:$16 sps:$4 sm:$0xff]   ;;  %v3014_v62 = vld [vmem:[%s2915_s8 + $0x80] ss:$16 sps:$4 sm:$0xff]  }
  0x9e   : > { %v3017_v63 = vld [vmem:[%s2915_s8 + $0x88] ss:$16 sps:$4 sm:$0xff]   ;;  %v3024_v2 = vld [vmem:[%s2915_s8 + $0x64] ss:$16 sps:$4 sm:$0xff]   ;;  %v3027_v3 = vld [vmem:[%s2915_s8 + $0x6c] ss:$16 sps:$4 sm:$0xff]  }
  0x9f   : > { %606 = vmatpush1.bf16.msra.mxu0 %v2252_v28  ;;  %679 = vmatpush1.bf16.msra.mxu1 %v2253_v29  ;;  %v3034_v5 = vld [vmem:[%s2915_s8 + $0x60] ss:$16 sps:$4 sm:$0xff]   ;;  %v3037_v6 = vld [vmem:[%s2915_s8 + $0x68] ss:$16 sps:$4 sm:$0xff]   ;;  %v3042_v7 = vld [vmem:[%s2915_s8 + $0x44] ss:$16 sps:$4 sm:$0xff]  }
  0xa0   : > { %607 = vmatprep.subr.bf16.mxu0 %v2254_v30  ;;  %680 = vmatprep.subr.bf16.mxu1 %v2256_v31  ;;  %v3045_v8 = vld [vmem:[%s2915_s8 + $0x4c] ss:$16 sps:$4 sm:$0xff]   ;;  %v3048_v9 = vld [vmem:[%s2915_s8 + $0x40] ss:$16 sps:$4 sm:$0xff]   ;;  %v3053_v10 = vld [vmem:[%s2915_s8 + $0x48] ss:$16 sps:$4 sm:$0xff]  }
  0xa1   : > { %v377_v12 = vld [vmem:[#allocation2 + $0x28] sm:$0xff]  ;;  %v378_v13 = vld [vmem:[#allocation2 + $0x38] sm:$0xff]  ;;  %v3068_v17 = vld [vmem:[%s2915_s8 + $0x20] ss:$16 sps:$4 sm:$0xff]   ;;  %v427_v25 = vsub.s32 2, %v418_v24  ;;  %v419_v26 = vsub.s32 0, %v418_v24 }
  0xa2   : > { %v3058_v14 = vld [vmem:[%s2915_s8 + $0x24] ss:$16 sps:$4 sm:$0xff]   ;;  %v3061_v15 = vld [vmem:[%s2915_s8 + $0x2c] ss:$16 sps:$4 sm:$0xff]   ;;  %v382_v16 = vpack.c.bf16 %v378_v13, %v377_v12  ;;  %v3071_v18 = vld [vmem:[%s2915_s8 + $0x28] ss:$16 sps:$4 sm:$0xff]  }
  0xa3   : > { %608 = vmatpush1.bf16.msra.mxu0 %v2258_v32  ;;  %681 = vmatpush1.bf16.msra.mxu1 %v2259_v33  ;;  %v3076_v19 = vld [vmem:[%s2915_s8 + $0x4] ss:$16 sps:$4 sm:$0xff]   ;;  %v3079_v20 = vld [vmem:[%s2915_s8 + $0xc] ss:$16 sps:$4 sm:$0xff]   ;;  %v3084_v21 = vld [vmem:[%s2915_s8] ss:$16 sps:$4 sm:$0xff]  }
  0xa4   : > { %609 = vmatprep.subr.bf16.mxu0 %v2260_v34  ;;  %682 = vmatprep.subr.bf16.mxu1 %v2262_v35  ;;  %v3087_v22 = vld [vmem:[%s2915_s8 + $0x8] ss:$16 sps:$4 sm:$0xff]   ;;  %v431_v27 = vsub.s32 3, %v418_v24  ;;  %v415_v28 = vld [vmem:[%s2917_s30] sm:$0xf]  ;;  %v423_v32 = vsub.s32 1, %v418_v24 }
  0xa5   : > { %v3138_v31 = vrot.slane %v415_v28, %v427_v25  ;;  %v420_v35 = vrot.slane %v415_v28, %v419_v26 }
  0xa7   : > { %610 = vmatpush1.bf16.msra.mxu0 %v2264_v36  ;;  %683 = vmatpush1.bf16.msra.mxu1 %v2265_v37  ;;  %v3144_v36 = vrot.slane %v415_v28, %v431_v27 }
  0xa8   : > { %611 = vmatprep.subr.bf16.mxu0 %v2266_v38  ;;  %684 = vmatprep.subr.bf16.mxu1 %v2268_v39  ;;  %v424_v39 = vrot.slane %v415_v28, %v423_v32 }
  0xab   : > { %612 = vmatpush1.bf16.msra.mxu0 %v2270_v40  ;;  %685 = vmatpush1.bf16.msra.mxu1 %v2271_v41 }
  0xac   : > { %971 = vmatprep.subr.bf16.mxu0 %v2960_v44  ;;  %1012 = vmatprep.subr.bf16.mxu1 %v2963_v45 }
  0xae   : > { %630 = vmatmul.mubr.bf16.vlgmr.msra.gmra.mxu0 %v379_v46  ;;  %703 = vmatmul.mubr.bf16.vlgmr.msra.gmra.mxu1 %v379_v46 }
  0xaf   : > { %972 = vmatpush1.bf16.msra.mxu0 %v2966_v47  ;;  %1013 = vmatpush1.bf16.msra.mxu1 %v2969_v48 }
  0xb0   : > { %973 = vmatprep.subr.bf16.mxu0 %v2974_v49  ;;  %1014 = vmatprep.subr.bf16.mxu1 %v2977_v50 }
  0xb1   : > { %639 = vmatprep.mubr.bf16.mxu0 %v3588_v11  ;;  %712 = vmatprep.mubr.bf16.mxu1 %v3588_v11 }
  0xb3   : > { %974 = vmatpush1.bf16.msra.mxu0 %v2980_v51  ;;  %1015 = vmatpush1.bf16.msra.mxu1 %v2983_v52 }
  0xb4   : > { %975 = vmatprep.subr.bf16.mxu0 %v2988_v55  ;;  %1016 = vmatprep.subr.bf16.mxu1 %v2993_v56 }
  0xb6   : > { %640 = vmatmul.mubr.bf16.gmra.mxu0 %v380_v57  ;;  %713 = vmatmul.mubr.bf16.gmra.mxu1 %v380_v57 }
  0xb7   : > { %976 = vmatpush1.bf16.msra.mxu0 %v2998_v58  ;;  %1017 = vmatpush1.bf16.msra.mxu1 %v3001_v59 }
  0xb8   : > { %977 = vmatprep.subr.bf16.mxu0 %v3006_v60  ;;  %1018 = vmatprep.subr.bf16.mxu1 %v3011_v61 }
  0xb9   : > { %649 = vmatprep.mubr.bf16.mxu0 %v3588_v11  ;;  %722 = vmatprep.mubr.bf16.mxu1 %v3588_v11 }
  0xbb   : > { %978 = vmatpush1.bf16.msra.mxu0 %v3014_v62  ;;  %1019 = vmatpush1.bf16.msra.mxu1 %v3017_v63 }
  0xbc   : > { %979 = vmatprep.subr.bf16.mxu0 %v3024_v2  ;;  %1020 = vmatprep.subr.bf16.mxu1 %v3027_v3 }
  0xbe   : > { %650 = vmatmul.mubr.bf16.gmra.mxu0 %v381_v4  ;;  %723 = vmatmul.mubr.bf16.gmra.mxu1 %v381_v4 }
  0xbf   : > { %980 = vmatpush1.bf16.msra.mxu0 %v3034_v5  ;;  %1021 = vmatpush1.bf16.msra.mxu1 %v3037_v6 }
  0xc0   : > { %981 = vmatprep.subr.bf16.mxu0 %v3042_v7  ;;  %1022 = vmatprep.subr.bf16.mxu1 %v3045_v8 }
  0xc1   : > { %659 = vmatprep.mubr.bf16.mxu0 %v3588_v11  ;;  %732 = vmatprep.mubr.bf16.mxu1 %v3588_v11 }
  0xc3   : > { %982 = vmatpush1.bf16.msra.mxu0 %v3048_v9  ;;  %1023 = vmatpush1.bf16.msra.mxu1 %v3053_v10 }
  0xc4   : > { %983 = vmatprep.subr.bf16.mxu0 %v3058_v14  ;;  %1024 = vmatprep.subr.bf16.mxu1 %v3061_v15 }
  0xc6   : > { %660 = vmatmul.mubr.bf16.gmra.mxu0 %v382_v16  ;;  %733 = vmatmul.mubr.bf16.gmra.mxu1 %v382_v16 }
  0xc7   : > { %984 = vmatpush1.bf16.msra.mxu0 %v3068_v17  ;;  %1025 = vmatpush1.bf16.msra.mxu1 %v3071_v18 }
  0xc8   : > { %985 = vmatprep.subr.bf16.mxu0 %v3076_v19  ;;  %1026 = vmatprep.subr.bf16.mxu1 %v3079_v20 }
  0xc9   : > { %1003 = vmatprep.mubr.bf16.mxu0 %v3588_v11  ;;  %1044 = vmatprep.mubr.bf16.mxu1 %v3588_v11 }
  0xcb   : > { %986 = vmatpush1.bf16.msra.mxu0 %v3084_v21  ;;  %1027 = vmatpush1.bf16.msra.mxu1 %v3087_v22 }
  0xcc   : > { %1087 = vmatprep.subr.bf16.mxu0 %v2960_v44  ;;  %1128 = vmatprep.subr.bf16.mxu1 %v2963_v45 }
  0xce   : > { %1004 = vmatmul.mubr.bf16.vlgmr.msra.gmra.mxu0 %v3588_v11  ;;  %1045 = vmatmul.mubr.bf16.vlgmr.msra.gmra.mxu1 %v3588_v11 }
  0xcf   : > { %1088 = vmatpush1.bf16.msra.mxu0 %v2966_v47  ;;  %1129 = vmatpush1.bf16.msra.mxu1 %v2969_v48 }
  0xd0   : > { %1089 = vmatprep.subr.bf16.mxu0 %v2974_v49  ;;  %1130 = vmatprep.subr.bf16.mxu1 %v2977_v50 }
  0xd1   : > { %1119 = vmatprep.mubr.bf16.mxu0 %v3588_v11  ;;  %1160 = vmatprep.mubr.bf16.mxu1 %v3588_v11 }
  0xd3   : > { %1090 = vmatpush1.bf16.msra.mxu0 %v2980_v51  ;;  %1131 = vmatpush1.bf16.msra.mxu1 %v2983_v52 }
  0xd4   : > { %1091 = vmatprep.subr.bf16.mxu0 %v2988_v55  ;;  %1132 = vmatprep.subr.bf16.mxu1 %v2993_v56 }
  0xd7   : > { %1092 = vmatpush1.bf16.msra.mxu0 %v2998_v58  ;;  %1133 = vmatpush1.bf16.msra.mxu1 %v3001_v59 }
  0xd8   : > { %1093 = vmatprep.subr.bf16.mxu0 %v3006_v60  ;;  %1134 = vmatprep.subr.bf16.mxu1 %v3011_v61 }
  0xdb   : > { %1094 = vmatpush1.bf16.msra.mxu0 %v3014_v62  ;;  %1135 = vmatpush1.bf16.msra.mxu1 %v3017_v63 }
  0xdc   : > { %1095 = vmatprep.subr.bf16.mxu0 %v3024_v2  ;;  %1136 = vmatprep.subr.bf16.mxu1 %v3027_v3 }
  0xdf   : > { %1096 = vmatpush1.bf16.msra.mxu0 %v3034_v5  ;;  %1137 = vmatpush1.bf16.msra.mxu1 %v3037_v6 }
  0xe0   : > { %1097 = vmatprep.subr.bf16.mxu0 %v3042_v7  ;;  %1138 = vmatprep.subr.bf16.mxu1 %v3045_v8 }
  0xe3   : > { %1098 = vmatpush1.bf16.msra.mxu0 %v3048_v9  ;;  %1139 = vmatpush1.bf16.msra.mxu1 %v3053_v10 }
  0xe4   : > { %1099 = vmatprep.subr.bf16.mxu0 %v3058_v14  ;;  %1140 = vmatprep.subr.bf16.mxu1 %v3061_v15 }
  0xe7   : > { %1100 = vmatpush1.bf16.msra.mxu0 %v3068_v17  ;;  %1141 = vmatpush1.bf16.msra.mxu1 %v3071_v18 }
  0xe8   : > { %1101 = vmatprep.subr.bf16.mxu0 %v3076_v19  ;;  %1142 = vmatprep.subr.bf16.mxu1 %v3079_v20 }
  0xeb   : > { %1102 = vmatpush1.bf16.msra.mxu0 %v3084_v21  ;;  %1143 = vmatpush1.bf16.msra.mxu1 %v3087_v22 }
  0xec   : > { %1203 = vmatprep.subr.bf16.mxu0 %v2960_v44  ;;  %1244 = vmatprep.subr.bf16.mxu1 %v2963_v45 }
 0x16e   : > { %v3134_v29 = vpop.f32.mrf.mxu0  ;;  %v3136_v30 = vpop.f32.mrf.mxu1 }
 0x170   : > { %v3140_v33 = vpop.f32.mrf.mxu0  ;;  %v3142_v34 = vpop.f32.mrf.mxu1 }
 0x172   : > { %v635_v37 = vpop.f32.mrf.mxu0  ;;  %v708_v38 = vpop.f32.mrf.mxu1 }
 0x173   : > { %v3146_v40 = vadd.f32 %v635_v37, %v420_v35  ;;  %v3149_v41 = vadd.f32 %v708_v38, %v3138_v31 }
 0x174   : > { %v637_v42 = vpop.f32.mrf.mxu0  ;;  %v710_v43 = vpop.f32.mrf.mxu1 }
 0x175   : > { %v3151_v46 = vadd.f32 %v637_v42, %v424_v39  ;;  %v3154_v53 = vadd.f32 %v710_v43, %v3144_v36 }
 0x176   : > { %v641_v54 = vpop.f32.mrf.mxu0  ;;  %v714_v57 = vpop.f32.mrf.mxu1 }
 0x177   : > { %v3156_v0 = vadd.f32 %v641_v54, %v420_v35  ;;  %v3159_v1 = vadd.f32 %v714_v57, %v3138_v31 }
 0x178   : > { %v643_v4 = vpop.f32.mrf.mxu0  ;;  %v716_v12 = vpop.f32.mrf.mxu1 }
 0x179   : > { %3603 = vst [vmem:[#allocation18_spill] sm:$0xff] %v3159_v1  ;;  %v3161_v13 = vadd.f32 %v643_v4, %v424_v39  ;;  %v3164_v16 = vadd.f32 %v716_v12, %v3144_v36 }
 0x17a   : > { %v645_v23 = vpop.f32.mrf.mxu0  ;;  %v718_v24 = vpop.f32.mrf.mxu1 }
 0x17b   : > { %v3166_v25 = vadd.f32 %v645_v23, %v420_v35  ;;  %v3169_v26 = vadd.f32 %v718_v24, %v3138_v31 }
 0x17c   : > { %v647_v27 = vpop.f32.mrf.mxu0  ;;  %v720_v28 = vpop.f32.mrf.mxu1 }
 0x17d   : > { %3604 = vst [vmem:[#allocation19_spill] sm:$0xff] %v3166_v25  ;;  %3605 = vst [vmem:[#allocation20_spill] sm:$0xff] %v3169_v26  ;;  %v3171_v32 = vadd.f32 %v647_v27, %v424_v39  ;;  %v3174_v37 = vadd.f32 %v720_v28, %v3144_v36 }
 0x17e   : > { %v651_v38 = vpop.f32.mrf.mxu0  ;;  %v724_v42 = vpop.f32.mrf.mxu1 }
 0x17f   : > { %3606 = vst [vmem:[#allocation21_spill] sm:$0xff] %v3171_v32  ;;  %3607 = vst [vmem:[#allocation22_spill] sm:$0xff] %v3174_v37  ;;  %v3176_v43 = vadd.f32 %v651_v38, %v420_v35  ;;  %v3179_v54 = vadd.f32 %v724_v42, %v3138_v31 }
 0x180   : > { %v653_v57 = vpop.f32.mrf.mxu0  ;;  %v726_v4 = vpop.f32.mrf.mxu1 }
 0x181   : > { %3608 = vst [vmem:[#allocation23_spill] sm:$0xff] %v3176_v43  ;;  %3609 = vst [vmem:[#allocation24_spill] sm:$0xff] %v3179_v54  ;;  %v3181_v12 = vadd.f32 %v653_v57, %v424_v39  ;;  %v3184_v23 = vadd.f32 %v726_v4, %v3144_v36 }
 0x182   : > { %v655_v24 = vpop.f32.mrf.mxu0  ;;  %v728_v27 = vpop.f32.mrf.mxu1 }
 0x183   : > { %3610 = vst [vmem:[#allocation25_spill] sm:$0xff] %v3181_v12  ;;  %3611 = vst [vmem:[#allocation26_spill] sm:$0xff] %v3184_v23  ;;  %v3186_v11 = vadd.f32 %v655_v24, %v420_v35  ;;  %v3189_v28 = vadd.f32 %v728_v27, %v3138_v31 }
 0x184   : > { %v657_v26 = vpop.f32.mrf.mxu0  ;;  %v730_v38 = vpop.f32.mrf.mxu1 }
 0x185   : > { %3612 = vst [vmem:[#allocation27_spill] sm:$0xff] %v3186_v11  ;;  %3613 = vst [vmem:[#allocation28_spill] sm:$0xff] %v3189_v28  ;;  %v3191_v43 = vadd.f32 %v657_v26, %v424_v39  ;;  %v3194_v42 = vadd.f32 %v730_v38, %v3144_v36 }
 0x186   : > { %v661_v54 = vpop.f32.mrf.mxu0  ;;  %v734_v57 = vpop.f32.mrf.mxu1 }
 0x187   : > { %3614 = vst [vmem:[#allocation29_spill] sm:$0xff] %v3191_v43  ;;  %3615 = vst [vmem:[#allocation30_spill] sm:$0xff] %v3194_v42  ;;  %v3196_v12 = vadd.f32 %v661_v54, %v420_v35  ;;  %v3199_v4 = vadd.f32 %v734_v57, %v3138_v31 }
 0x188   : > { %v663_v23 = vpop.f32.mrf.mxu0  ;;  %v736_v24 = vpop.f32.mrf.mxu1 }
 0x189   : > { %3616 = vst [vmem:[#allocation31_spill] sm:$0xff] %v3196_v12  ;;  %3617 = vst [vmem:[#allocation32_spill] sm:$0xff] %v3199_v4  ;;  %v3201_v11 = vadd.f32 %v663_v23, %v424_v39  ;;  %v3204_v27 = vadd.f32 %v736_v24, %v3144_v36  ;;  %v632_v12 = vadd.f32 %v3134_v29, %v420_v35 }
 0x18a   : > { %v665_v28 = vpop.f32.mrf.mxu0  ;;  %v738_v26 = vpop.f32.mrf.mxu1  ;;  %v634_v24 = vadd.f32 %v3140_v33, %v424_v39 }
 0x18b   : > { %3618 = vst [vmem:[#allocation33_spill] sm:$0xff] %v3201_v11  ;;  %3619 = vst [vmem:[#allocation34_spill] sm:$0xff] %v3204_v27  ;;  %v3206_v43 = vadd.f32 %v665_v28, %v420_v35  ;;  %v3209_v38 = vadd.f32 %v738_v26, %v3138_v31  ;;  %v707_v35 = vadd.f32 %v3142_v34, %v3144_v36 }
 0x18c   : > { %v667_v42 = vpop.f32.mrf.mxu0  ;;  %v740_v54 = vpop.f32.mrf.mxu1 }
 0x18d   : > { %3620 = vst [vmem:[#allocation35_spill] sm:$0xff] %v3206_v43  ;;  %3621 = vst [vmem:[#allocation36_spill] sm:$0xff] %v3209_v38  ;;  %v3212_v57 = vadd.f32 %v667_v42, %v424_v39  ;;  %v3215_v4 = vadd.f32 %v740_v54, %v3144_v36  ;;  %v705_v54 = vadd.f32 %v3136_v30, %v3138_v31 }
 0x18e   : > { %v1005_v23 = vpop.f32.mrf.mxu0  ;;  %v1046_v11 = vpop.f32.mrf.mxu1 }
 0x18f   : > { %v1053_v27 = vadd.f32 %v1005_v23, %v632_v12  ;;  %v1055_v12 = vadd.f32 %v1046_v11, %v705_v54 }
 0x190   : > { %v1007_v37 = vpop.f32.mrf.mxu0  ;;  %v1048_v28 = vpop.f32.mrf.mxu1 }
 0x191   : > { %v2117_v43 = vmul.f32 -1.442695, %v1053_v27  ;;  %v1054_v32 = vadd.f32 %v1007_v37, %v634_v24  ;;  %v1056_v42 = vadd.f32 %v1048_v28, %v707_v35 }
 0x192   : > { %v1009_v26 = vpop.f32.mrf.mxu0  ;;  %v1050_v38 = vpop.f32.mrf.mxu1 }
 0x193   : > { %2320 = vpow2.f32 %v2117_v43  ;;  %v2118_v25 = vmul.f32 -1.442695, %v1054_v32  ;;  %v2119_v33 = vmul.f32 -1.442695, %v1056_v42  ;;  %v3622_v26 = vmov 0  }
 0x194   : > { %v1010_v1 = vpop.f32.mrf.mxu0  ;;  %v1051_v29 = vpop.f32.mrf.mxu1 }
 0x195   : > { %2322 = vpow2.f32 %v2118_v25 }
 0x196   : > { %2324 = vpow2.f32 %v2119_v33 }
 0x1a0   : > { %v2321_v39 = vpop.eup %2320 }
 0x1a1   : > { %v1060_v23 = vadd.f32 1.0, %v2321_v39 }
 0x1a2   : > { %v2323_v27 = vpop.eup %2322 }
 0x1a3   : > { %2326 = vrcp.f32 %v1060_v23  ;;  %v1066_v37 = vadd.f32 1.0, %v2323_v27  ;;  %v2325_v1 = vpop.eup %2324 }
 0x1a4   : > { %2328 = vtanh.f32 %v1055_v12  ;;  %v1073_v38 = vadd.f32 1.0, %v2325_v1 }
 0x1a5   : > { %2330 = vrcp.f32 %v1066_v37 }
 0x1a6   : > { %2332 = vrcp.f32 %v1073_v38 }
 0x1b0   : > { %v2327_v32 = vpop.eup %2326 }
 0x1b1   : > { %v2329_v25 = vpop.eup %2328 }
 0x1b2   : > { %v2331_v43 = vpop.eup %2330  ;;  %v1077_v36 = vmul.f32 %v2329_v25, %v2327_v32 }
 0x1b3   : > { %v1076_v34 = vmul.f32 0.0, %v2331_v43  ;;  %v2333_v11 = vpop.eup %2332 }
 0x1b5   : > { %v3222_v24 = vadd.f32 %v1077_v36, %v1076_v34 }
 0x1b7   : > { %2334 = vtanh.f32 %v3222_v24 }
 0x1c4   : > { %v2335_v30 = vpop.eup %2334 }
 0x1c5   : > { %v1080_v31 = vmul.f32 %v2335_v30, %v2333_v11 }
 0x1c7   : > { %1081 = vst [vmem:[#allocation2 + $0x30] sm:$0xff] %v1080_v31  ;;  %v1086_v28 = vpack.c.bf16 %v1080_v31, %v1080_v31 }
 0x1c9   : > { %1120 = vmatmul.mubr.bf16.vlgmr.msra.gmra.mxu0 %v1086_v28  ;;  %1161 = vmatmul.mubr.bf16.vlgmr.msra.gmra.mxu1 %v1086_v28 }
 0x1ca   : > { %1204 = vmatpush1.bf16.msra.mxu0 %v2966_v47  ;;  %1245 = vmatpush1.bf16.msra.mxu1 %v2969_v48 }
 0x1cb   : > { %1205 = vmatprep.subr.bf16.mxu0 %v2974_v49  ;;  %1246 = vmatprep.subr.bf16.mxu1 %v2977_v50 }
 0x1cc   : > { %1235 = vmatprep.mubr.bf16.mxu0 %v3622_v26  ;;  %1276 = vmatprep.mubr.bf16.mxu1 %v3622_v26 }
 0x1ce   : > { %1206 = vmatpush1.bf16.msra.mxu0 %v2980_v51  ;;  %1247 = vmatpush1.bf16.msra.mxu1 %v2983_v52 }
 0x1cf   : > { %1207 = vmatprep.subr.bf16.mxu0 %v2988_v55  ;;  %1248 = vmatprep.subr.bf16.mxu1 %v2993_v56 }
 0x1d2   : > { %1208 = vmatpush1.bf16.msra.mxu0 %v2998_v58  ;;  %1249 = vmatpush1.bf16.msra.mxu1 %v3001_v59 }
 0x1d3   : > { %1209 = vmatprep.subr.bf16.mxu0 %v3006_v60  ;;  %1250 = vmatprep.subr.bf16.mxu1 %v3011_v61 }
 0x1d6   : > { %1210 = vmatpush1.bf16.msra.mxu0 %v3014_v62  ;;  %1251 = vmatpush1.bf16.msra.mxu1 %v3017_v63 }
 0x1d7   : > { %1211 = vmatprep.subr.bf16.mxu0 %v3024_v2  ;;  %1252 = vmatprep.subr.bf16.mxu1 %v3027_v3 }
 0x1da   : > { %1212 = vmatpush1.bf16.msra.mxu0 %v3034_v5  ;;  %1253 = vmatpush1.bf16.msra.mxu1 %v3037_v6 }
 0x1db   : > { %1213 = vmatprep.subr.bf16.mxu0 %v3042_v7  ;;  %1254 = vmatprep.subr.bf16.mxu1 %v3045_v8 }
 0x1de   : > { %1214 = vmatpush1.bf16.msra.mxu0 %v3048_v9  ;;  %1255 = vmatpush1.bf16.msra.mxu1 %v3053_v10 }
 0x1df   : > { %1215 = vmatprep.subr.bf16.mxu0 %v3058_v14  ;;  %1256 = vmatprep.subr.bf16.mxu1 %v3061_v15 }
 0x1e2   : > { %1216 = vmatpush1.bf16.msra.mxu0 %v3068_v17  ;;  %1257 = vmatpush1.bf16.msra.mxu1 %v3071_v18 }
 0x1e3   : > { %1217 = vmatprep.subr.bf16.mxu0 %v3076_v19  ;;  %1258 = vmatprep.subr.bf16.mxu1 %v3079_v20 }
 0x1e6   : > { %1218 = vmatpush1.bf16.msra.mxu0 %v3084_v21  ;;  %1259 = vmatpush1.bf16.msra.mxu1 %v3087_v22 }
 0x1e7   : > { %1319 = vmatprep.subr.bf16.mxu0 %v2960_v44  ;;  %1360 = vmatprep.subr.bf16.mxu1 %v2963_v45 }
 0x289   : > { %v1121_v29 = vpop.f32.mrf.mxu0  ;;  %v1162_v35 = vpop.f32.mrf.mxu1 }
 0x28a   : > { %v1169_v42 = vadd.f32 %v1121_v29, %v3146_v40  ;;  %v1171_v43 = vadd.f32 %v1162_v35, %v3149_v41 }
 0x28b   : > { %v1123_v54 = vpop.f32.mrf.mxu0  ;;  %v1164_v33 = vpop.f32.mrf.mxu1 }
 0x28c   : > { %v2120_v39 = vmul.f32 -1.442695, %v1169_v42  ;;  %v1170_v12 = vadd.f32 %v1123_v54, %v3151_v46  ;;  %v1172_v25 = vadd.f32 %v1164_v33, %v3154_v53 }
 0x28d   : > { %v1125_v23 = vpop.f32.mrf.mxu0  ;;  %v1166_v27 = vpop.f32.mrf.mxu1 }
 0x28e   : > { %2336 = vpow2.f32 %v2120_v39  ;;  %v2121_v37 = vmul.f32 -1.442695, %v1170_v12  ;;  %v2122_v38 = vmul.f32 -1.442695, %v1172_v25 }
 0x28f   : > { %v1126_v1 = vpop.f32.mrf.mxu0  ;;  %v1167_v32 = vpop.f32.mrf.mxu1 }
 0x290   : > { %2338 = vpow2.f32 %v2121_v37 }
 0x291   : > { %2340 = vtanh.f32 %v1171_v43 }
 0x292   : > { %2342 = vpow2.f32 %v2122_v38 }
 0x29b   : > { %v2337_v34 = vpop.eup %2336 }
 0x29c   : > { %v1176_v36 = vadd.f32 1.0, %v2337_v34 }
 0x29d   : > { %v2339_v40 = vpop.eup %2338 }
 0x29e   : > { %2344 = vrcp.f32 %v1176_v36  ;;  %v1182_v11 = vadd.f32 1.0, %v2339_v40  ;;  %v2341_v46 = vpop.eup %2340 }
 0x29f   : > { %v2343_v30 = vpop.eup %2342 }
 0x2a0   : > { %2346 = vrcp.f32 %v1182_v11  ;;  %v1189_v42 = vadd.f32 1.0, %v2343_v30  ;;  %v3623_v11 = vld [vmem:[#allocation18_spill] sm:$0xff] }
 0x2a2   : > { %2348 = vrcp.f32 %v1189_v42 }
 0x2ab   : > { %v2345_v31 = vpop.eup %2344 }
 0x2ac   : > { %v1193_v28 = vmul.f32 %v2345_v31, %v2341_v46 }
 0x2ad   : > { %v2347_v29 = vpop.eup %2346 }
 0x2ae   : > { %v1192_v54 = vmul.f32 %v2347_v29, %v3222_v24 }
 0x2af   : > { %v2349_v41 = vpop.eup %2348 }
 0x2b0   : > { %v3264_v53 = vadd.f32 %v1193_v28, %v1192_v54 }
 0x2b2   : > { %2350 = vtanh.f32 %v3264_v53 }
 0x2bf   : > { %v2351_v35 = vpop.eup %2350 }
 0x2c0   : > { %v1196_v33 = vmul.f32 %v2351_v35, %v2349_v41 }
 0x2c2   : > { %1197 = vst [vmem:[#allocation2] sm:$0xff] %v1196_v33  ;;  %v1202_v39 = vpack.c.bf16 %v1196_v33, %v1196_v33 }
 0x2c4   : > { %1236 = vmatmul.mubr.bf16.vlgmr.msra.gmra.mxu0 %v1202_v39  ;;  %1277 = vmatmul.mubr.bf16.vlgmr.msra.gmra.mxu1 %v1202_v39 }
 0x2c5   : > { %1320 = vmatpush1.bf16.msra.mxu0 %v2966_v47  ;;  %1361 = vmatpush1.bf16.msra.mxu1 %v2969_v48 }
 0x2c6   : > { %1321 = vmatprep.subr.bf16.mxu0 %v2974_v49  ;;  %1362 = vmatprep.subr.bf16.mxu1 %v2977_v50 }
 0x2c7   : > { %1351 = vmatprep.mubr.bf16.mxu0 %v3622_v26  ;;  %1392 = vmatprep.mubr.bf16.mxu1 %v3622_v26 }
 0x2c9   : > { %1322 = vmatpush1.bf16.msra.mxu0 %v2980_v51  ;;  %1363 = vmatpush1.bf16.msra.mxu1 %v2983_v52 }
 0x2ca   : > { %1323 = vmatprep.subr.bf16.mxu0 %v2988_v55  ;;  %1364 = vmatprep.subr.bf16.mxu1 %v2993_v56 }
 0x2cd   : > { %1324 = vmatpush1.bf16.msra.mxu0 %v2998_v58  ;;  %1365 = vmatpush1.bf16.msra.mxu1 %v3001_v59 }
 0x2ce   : > { %1325 = vmatprep.subr.bf16.mxu0 %v3006_v60  ;;  %1366 = vmatprep.subr.bf16.mxu1 %v3011_v61 }
 0x2d1   : > { %1326 = vmatpush1.bf16.msra.mxu0 %v3014_v62  ;;  %1367 = vmatpush1.bf16.msra.mxu1 %v3017_v63 }
 0x2d2   : > { %1327 = vmatprep.subr.bf16.mxu0 %v3024_v2  ;;  %1368 = vmatprep.subr.bf16.mxu1 %v3027_v3 }
 0x2d5   : > { %1328 = vmatpush1.bf16.msra.mxu0 %v3034_v5  ;;  %1369 = vmatpush1.bf16.msra.mxu1 %v3037_v6 }
 0x2d6   : > { %1329 = vmatprep.subr.bf16.mxu0 %v3042_v7  ;;  %1370 = vmatprep.subr.bf16.mxu1 %v3045_v8 }
 0x2d9   : > { %1330 = vmatpush1.bf16.msra.mxu0 %v3048_v9  ;;  %1371 = vmatpush1.bf16.msra.mxu1 %v3053_v10 }
 0x2da   : > { %1331 = vmatprep.subr.bf16.mxu0 %v3058_v14  ;;  %1372 = vmatprep.subr.bf16.mxu1 %v3061_v15 }
 0x2dd   : > { %1332 = vmatpush1.bf16.msra.mxu0 %v3068_v17  ;;  %1373 = vmatpush1.bf16.msra.mxu1 %v3071_v18 }
 0x2de   : > { %1333 = vmatprep.subr.bf16.mxu0 %v3076_v19  ;;  %1374 = vmatprep.subr.bf16.mxu1 %v3079_v20 }
 0x2e1   : > { %1334 = vmatpush1.bf16.msra.mxu0 %v3084_v21  ;;  %1375 = vmatpush1.bf16.msra.mxu1 %v3087_v22 }
 0x2e2   : > { %1435 = vmatprep.subr.bf16.mxu0 %v2960_v44  ;;  %1476 = vmatprep.subr.bf16.mxu1 %v2963_v45 }
 0x384   : > { %v1237_v24 = vpop.f32.mrf.mxu0  ;;  %v1278_v12 = vpop.f32.mrf.mxu1 }
 0x385   : > { %v1285_v23 = vadd.f32 %v1237_v24, %v3156_v0  ;;  %v1287_v46 = vadd.f32 %v1278_v12, %v3623_v11 }
 0x386   : > { %v1239_v27 = vpop.f32.mrf.mxu0  ;;  %v1280_v37 = vpop.f32.mrf.mxu1 }
 0x387   : > { %v2123_v1 = vmul.f32 -1.442695, %v1285_v23  ;;  %v1286_v32 = vadd.f32 %v1239_v27, %v3161_v13  ;;  %v1288_v40 = vadd.f32 %v1280_v37, %v3164_v16 }
 0x388   : > { %v1241_v25 = vpop.f32.mrf.mxu0  ;;  %v1282_v43 = vpop.f32.mrf.mxu1 }
 0x389   : > { %2352 = vpow2.f32 %v2123_v1  ;;  %v2124_v38 = vmul.f32 -1.442695, %v1286_v32  ;;  %v2125_v30 = vmul.f32 -1.442695, %v1288_v40  ;;  %v3624_v1 = vld [vmem:[#allocation19_spill] sm:$0xff] }
 0x38a   : > { %v1242_v34 = vpop.f32.mrf.mxu0  ;;  %v1283_v36 = vpop.f32.mrf.mxu1 }
 0x38b   : > { %2354 = vpow2.f32 %v2124_v38  ;;  %v3625_v34 = vld [vmem:[#allocation21_spill] sm:$0xff] }
 0x38c   : > { %2356 = vtanh.f32 %v1287_v46 }
 0x38d   : > { %2358 = vpow2.f32 %v2125_v30 }
 0x396   : > { %v2353_v31 = vpop.eup %2352 }
 0x397   : > { %v1292_v28 = vadd.f32 1.0, %v2353_v31 }
 0x398   : > { %v2355_v0 = vpop.eup %2354 }
 0x399   : > { %2360 = vrcp.f32 %v1292_v28  ;;  %v1298_v29 = vadd.f32 1.0, %v2355_v0  ;;  %v2357_v13 = vpop.eup %2356  ;;  %v3626_v28 = vld [vmem:[#allocation22_spill] sm:$0xff]  ;;  %v3627_v0 = vld [vmem:[#allocation20_spill] sm:$0xff] }
 0x39a   : > { %v2359_v42 = vpop.eup %2358 }
 0x39b   : > { %2362 = vrcp.f32 %v1298_v29  ;;  %v1305_v33 = vadd.f32 1.0, %v2359_v42 }
 0x39d   : > { %2364 = vrcp.f32 %v1305_v33 }
 0x3a6   : > { %v2361_v54 = vpop.eup %2360 }
 0x3a7   : > { %v1309_v41 = vmul.f32 %v2361_v54, %v2357_v13 }
 0x3a8   : > { %v2363_v35 = vpop.eup %2362 }
 0x3a9   : > { %v1308_v39 = vmul.f32 %v2363_v35, %v3264_v53 }
 0x3aa   : > { %v2365_v24 = vpop.eup %2364 }
 0x3ab   : > { %v3306_v16 = vadd.f32 %v1309_v41, %v1308_v39 }
 0x3ad   : > { %2366 = vtanh.f32 %v3306_v16 }
 0x3ba   : > { %v2367_v12 = vpop.eup %2366 }
 0x3bb   : > { %v1312_v23 = vmul.f32 %v2367_v12, %v2365_v24 }
 0x3bd   : > { %1313 = vst [vmem:[#allocation2 + $0x18] sm:$0xff] %v1312_v23  ;;  %v1318_v27 = vpack.c.bf16 %v1312_v23, %v1312_v23 }
 0x3bf   : > { %1352 = vmatmul.mubr.bf16.vlgmr.msra.gmra.mxu0 %v1318_v27  ;;  %1393 = vmatmul.mubr.bf16.vlgmr.msra.gmra.mxu1 %v1318_v27 }
 0x3c0   : > { %1436 = vmatpush1.bf16.msra.mxu0 %v2966_v47  ;;  %1477 = vmatpush1.bf16.msra.mxu1 %v2969_v48 }
 0x3c1   : > { %1437 = vmatprep.subr.bf16.mxu0 %v2974_v49  ;;  %1478 = vmatprep.subr.bf16.mxu1 %v2977_v50 }
 0x3c2   : > { %1467 = vmatprep.mubr.bf16.mxu0 %v3622_v26  ;;  %1508 = vmatprep.mubr.bf16.mxu1 %v3622_v26 }
 0x3c4   : > { %1438 = vmatpush1.bf16.msra.mxu0 %v2980_v51  ;;  %1479 = vmatpush1.bf16.msra.mxu1 %v2983_v52 }
 0x3c5   : > { %1439 = vmatprep.subr.bf16.mxu0 %v2988_v55  ;;  %1480 = vmatprep.subr.bf16.mxu1 %v2993_v56 }
 0x3c8   : > { %1440 = vmatpush1.bf16.msra.mxu0 %v2998_v58  ;;  %1481 = vmatpush1.bf16.msra.mxu1 %v3001_v59 }
 0x3c9   : > { %1441 = vmatprep.subr.bf16.mxu0 %v3006_v60  ;;  %1482 = vmatprep.subr.bf16.mxu1 %v3011_v61 }
 0x3cc   : > { %1442 = vmatpush1.bf16.msra.mxu0 %v3014_v62  ;;  %1483 = vmatpush1.bf16.msra.mxu1 %v3017_v63 }
 0x3cd   : > { %1443 = vmatprep.subr.bf16.mxu0 %v3024_v2  ;;  %1484 = vmatprep.subr.bf16.mxu1 %v3027_v3 }
 0x3d0   : > { %1444 = vmatpush1.bf16.msra.mxu0 %v3034_v5  ;;  %1485 = vmatpush1.bf16.msra.mxu1 %v3037_v6 }
 0x3d1   : > { %1445 = vmatprep.subr.bf16.mxu0 %v3042_v7  ;;  %1486 = vmatprep.subr.bf16.mxu1 %v3045_v8 }
 0x3d4   : > { %1446 = vmatpush1.bf16.msra.mxu0 %v3048_v9  ;;  %1487 = vmatpush1.bf16.msra.mxu1 %v3053_v10 }
 0x3d5   : > { %1447 = vmatprep.subr.bf16.mxu0 %v3058_v14  ;;  %1488 = vmatprep.subr.bf16.mxu1 %v3061_v15 }
 0x3d8   : > { %1448 = vmatpush1.bf16.msra.mxu0 %v3068_v17  ;;  %1489 = vmatpush1.bf16.msra.mxu1 %v3071_v18 }
 0x3d9   : > { %1449 = vmatprep.subr.bf16.mxu0 %v3076_v19  ;;  %1490 = vmatprep.subr.bf16.mxu1 %v3079_v20 }
 0x3dc   : > { %1450 = vmatpush1.bf16.msra.mxu0 %v3084_v21  ;;  %1491 = vmatpush1.bf16.msra.mxu1 %v3087_v22 }
 0x3dd   : > { %1551 = vmatprep.subr.bf16.mxu0 %v2960_v44  ;;  %1592 = vmatprep.subr.bf16.mxu1 %v2963_v45 }
 0x47f   : > { %v1353_v53 = vpop.f32.mrf.mxu0  ;;  %v1394_v37 = vpop.f32.mrf.mxu1 }
 0x480   : > { %v1401_v32 = vadd.f32 %v1353_v53, %v3624_v1  ;;  %v1403_v45 = vadd.f32 %v1394_v37, %v3627_v0 }
 0x481   : > { %v1355_v25 = vpop.f32.mrf.mxu0  ;;  %v1396_v43 = vpop.f32.mrf.mxu1 }
 0x482   : > { %v2126_v38 = vmul.f32 -1.442695, %v1401_v32  ;;  %v1402_v36 = vadd.f32 %v1355_v25, %v3625_v34  ;;  %v1404_v44 = vadd.f32 %v1396_v43, %v3626_v28 }
 0x483   : > { %v1357_v40 = vpop.f32.mrf.mxu0  ;;  %v1398_v11 = vpop.f32.mrf.mxu1 }
 0x484   : > { %2368 = vpow2.f32 %v2126_v38  ;;  %v2127_v46 = vmul.f32 -1.442695, %v1402_v36  ;;  %v2128_v29 = vmul.f32 -1.442695, %v1404_v44 }
 0x485   : > { %v1358_v30 = vpop.f32.mrf.mxu0  ;;  %v1399_v31 = vpop.f32.mrf.mxu1 }
 0x486   : > { %2370 = vpow2.f32 %v2127_v46 }
 0x487   : > { %2372 = vtanh.f32 %v1403_v45 }
 0x488   : > { %2374 = vpow2.f32 %v2128_v29 }
 0x491   : > { %v2369_v13 = vpop.eup %2368 }
 0x492   : > { %v1408_v42 = vadd.f32 1.0, %v2369_v13  ;;  %v3400_v13 = vld [vmem:[%s2915_s8 + $0xe0] ss:$16 sps:$4 sm:$0xff]  }
 0x493   : > { %v2371_v54 = vpop.eup %2370 }
 0x494   : > { %2376 = vrcp.f32 %v1408_v42  ;;  %v1414_v41 = vadd.f32 1.0, %v2371_v54  ;;  %v2373_v35 = vpop.eup %2372  ;;  %v3404_v42 = vld [vmem:[%s2915_s8 + $0xe8] ss:$16 sps:$4 sm:$0xff]   ;;  %v3408_v54 = vld [vmem:[%s2915_s8 + $0xc4] ss:$16 sps:$4 sm:$0xff]  }
 0x495   : > { %v2375_v33 = vpop.eup %2374 }
 0x496   : > { %2378 = vrcp.f32 %v1414_v41  ;;  %v1421_v23 = vadd.f32 1.0, %v2375_v33  ;;  %v3412_v41 = vld [vmem:[%s2915_s8 + $0xcc] ss:$16 sps:$4 sm:$0xff]   ;;  %v3422_v33 = vld [vmem:[%s2915_s8 + $0xc8] ss:$16 sps:$4 sm:$0xff]  }
 0x498   : > { %2380 = vrcp.f32 %v1421_v23  ;;  %v3438_v23 = vld [vmem:[%s2915_s8 + $0xa8] ss:$16 sps:$4 sm:$0xff]  }
 0x4a1   : > { %v2377_v39 = vpop.eup %2376 }
 0x4a2   : > { %v1425_v24 = vmul.f32 %v2377_v39, %v2373_v35  ;;  %v3418_v35 = vld [vmem:[%s2915_s8 + $0xc0] ss:$16 sps:$4 sm:$0xff]   ;;  %v3426_v39 = vld [vmem:[%s2915_s8 + $0xa4] ss:$16 sps:$4 sm:$0xff]  }
 0x4a3   : > { %v2379_v12 = vpop.eup %2378 }
 0x4a4   : > { %v1424_v27 = vmul.f32 %v2379_v12, %v3306_v16  ;;  %v3434_v12 = vld [vmem:[%s2915_s8 + $0xa0] ss:$16 sps:$4 sm:$0xff]  }
 0x4a5   : > { %v2381_v37 = vpop.eup %2380 }
 0x4a6   : > { %v3348_v53 = vadd.f32 %v1425_v24, %v1424_v27  ;;  %v3430_v24 = vld [vmem:[%s2915_s8 + $0xac] ss:$16 sps:$4 sm:$0xff]   ;;  %v3442_v27 = vld [vmem:[%s2915_s8 + $0x84] ss:$16 sps:$4 sm:$0xff]  }
 0x4a8   : > { %2382 = vtanh.f32 %v3348_v53 }
 0x4b5   : > { %v2383_v1 = vpop.eup %2382 }
 0x4b6   : > { %v1428_v32 = vmul.f32 %v2383_v1, %v2381_v37  ;;  %v3450_v37 = vld [vmem:[%s2915_s8 + $0x80] ss:$16 sps:$4 sm:$0xff]   ;;  %v3454_v1 = vld [vmem:[%s2915_s8 + $0x88] ss:$16 sps:$4 sm:$0xff]  }
 0x4b8   : > { %1429 = vst [vmem:[#allocation2 + $0x10] sm:$0xff] %v1428_v32  ;;  %v1434_v25 = vpack.c.bf16 %v1428_v32, %v1428_v32  ;;  %v3458_v32 = vld [vmem:[%s2915_s8 + $0x64] ss:$16 sps:$4 sm:$0xff]  }
 0x4ba   : > { %1468 = vmatmul.mubr.bf16.vlgmr.msra.gmra.mxu0 %v1434_v25  ;;  %1509 = vmatmul.mubr.bf16.vlgmr.msra.gmra.mxu1 %v1434_v25  ;;  %v3462_v25 = vld [vmem:[%s2915_s8 + $0x6c] ss:$16 sps:$4 sm:$0xff]  }
 0x4bb   : > { %1552 = vmatpush1.bf16.msra.mxu0 %v2966_v47  ;;  %1593 = vmatpush1.bf16.msra.mxu1 %v2969_v48  ;;  %v3384_v47 = vld [vmem:[%s2915_s8 + $0xe4] ss:$16 sps:$4 sm:$0xff]   ;;  %v3388_v48 = vld [vmem:[%s2915_s8 + $0xec] ss:$16 sps:$4 sm:$0xff]  }
 0x4bc   : > { %1553 = vmatprep.subr.bf16.mxu0 %v2974_v49  ;;  %1594 = vmatprep.subr.bf16.mxu1 %v2977_v50 }
 0x4bd   : > { %1583 = vmatprep.mubr.bf16.mxu0 %v3622_v26  ;;  %1624 = vmatprep.mubr.bf16.mxu1 %v3622_v26 }
 0x4bf   : > { %1554 = vmatpush1.bf16.msra.mxu0 %v2980_v51  ;;  %1595 = vmatpush1.bf16.msra.mxu1 %v2983_v52  ;;  %v3628_v51 = vld [vmem:[#allocation23_spill] sm:$0xff] }
 0x4c0   : > { %1555 = vmatprep.subr.bf16.mxu0 %v2988_v55  ;;  %1596 = vmatprep.subr.bf16.mxu1 %v2993_v56 }
 0x4c3   : > { %1556 = vmatpush1.bf16.msra.mxu0 %v2998_v58  ;;  %1597 = vmatpush1.bf16.msra.mxu1 %v3001_v59  ;;  %v3629_v59 = vld [vmem:[#allocation25_spill] sm:$0xff] }
 0x4c4   : > { %1557 = vmatprep.subr.bf16.mxu0 %v3006_v60  ;;  %1598 = vmatprep.subr.bf16.mxu1 %v3011_v61 }
 0x4c7   : > { %1558 = vmatpush1.bf16.msra.mxu0 %v3014_v62  ;;  %1599 = vmatpush1.bf16.msra.mxu1 %v3017_v63 }
 0x4c8   : > { %1559 = vmatprep.subr.bf16.mxu0 %v3024_v2  ;;  %1600 = vmatprep.subr.bf16.mxu1 %v3027_v3 }
 0x4cb   : > { %1560 = vmatpush1.bf16.msra.mxu0 %v3034_v5  ;;  %1601 = vmatpush1.bf16.msra.mxu1 %v3037_v6  ;;  %v3630_v5 = vld [vmem:[#allocation26_spill] sm:$0xff] }
 0x4cc   : > { %1561 = vmatprep.subr.bf16.mxu0 %v3042_v7  ;;  %1602 = vmatprep.subr.bf16.mxu1 %v3045_v8  ;;  %v3631_v7 = vld [vmem:[#allocation24_spill] sm:$0xff] }
 0x4cf   : > { %1562 = vmatpush1.bf16.msra.mxu0 %v3048_v9  ;;  %1603 = vmatpush1.bf16.msra.mxu1 %v3053_v10 }
 0x4d0   : > { %1563 = vmatprep.subr.bf16.mxu0 %v3058_v14  ;;  %1604 = vmatprep.subr.bf16.mxu1 %v3061_v15 }
 0x4d3   : > { %1564 = vmatpush1.bf16.msra.mxu0 %v3068_v17  ;;  %1605 = vmatpush1.bf16.msra.mxu1 %v3071_v18 }
 0x4d4   : > { %1565 = vmatprep.subr.bf16.mxu0 %v3076_v19  ;;  %1606 = vmatprep.subr.bf16.mxu1 %v3079_v20 }
 0x4d7   : > { %1566 = vmatpush1.bf16.msra.mxu0 %v3084_v21  ;;  %1607 = vmatpush1.bf16.msra.mxu1 %v3087_v22 }
 0x4d8   : > { %1667 = vmatprep.subr.bf16.mxu0 %v3384_v47  ;;  %1708 = vmatprep.subr.bf16.mxu1 %v3388_v48 }
 0x57a   : > { %v1469_v49 = vpop.f32.mrf.mxu0  ;;  %v1510_v50 = vpop.f32.mrf.mxu1 }
 0x57b   : > { %v1517_v52 = vadd.f32 %v1469_v49, %v3628_v51  ;;  %v1519_v8 = vadd.f32 %v1510_v50, %v3631_v7  ;;  %v3466_v49 = vld [vmem:[%s2915_s8 + $0x60] ss:$16 sps:$4 sm:$0xff]   ;;  %v3470_v50 = vld [vmem:[%s2915_s8 + $0x68] ss:$16 sps:$4 sm:$0xff]   ;;  %v3474_v51 = vld [vmem:[%s2915_s8 + $0x44] ss:$16 sps:$4 sm:$0xff]  }
 0x57c   : > { %v1471_v55 = vpop.f32.mrf.mxu0  ;;  %v1512_v56 = vpop.f32.mrf.mxu1 }
 0x57d   : > { %v2129_v58 = vmul.f32 -1.442695, %v1517_v52  ;;  %v1518_v60 = vadd.f32 %v1471_v55, %v3629_v59  ;;  %v1520_v6 = vadd.f32 %v1512_v56, %v3630_v5  ;;  %v3478_v52 = vld [vmem:[%s2915_s8 + $0x4c] ss:$16 sps:$4 sm:$0xff]   ;;  %v3482_v55 = vld [vmem:[%s2915_s8 + $0x40] ss:$16 sps:$4 sm:$0xff]  }
 0x57e   : > { %v1473_v61 = vpop.f32.mrf.mxu0  ;;  %v1514_v62 = vpop.f32.mrf.mxu1  ;;  %v3486_v56 = vld [vmem:[%s2915_s8 + $0x48] ss:$16 sps:$4 sm:$0xff]  }
 0x57f   : > { %2384 = vpow2.f32 %v2129_v58  ;;  %v2130_v63 = vmul.f32 -1.442695, %v1518_v60  ;;  %v2131_v9 = vmul.f32 -1.442695, %v1520_v6  ;;  %v3632_v59 = vld [vmem:[#allocation27_spill] sm:$0xff] }
 0x580   : > { %v1474_v2 = vpop.f32.mrf.mxu0  ;;  %v1515_v3 = vpop.f32.mrf.mxu1 }
 0x581   : > { %2386 = vpow2.f32 %v2130_v63  ;;  %v3635_v3 = vld [vmem:[#allocation28_spill] sm:$0xff] }
 0x582   : > { %2388 = vtanh.f32 %v1519_v8 }
 0x583   : > { %2390 = vpow2.f32 %v2131_v9 }
 0x58c   : > { %v2385_v10 = vpop.eup %2384 }
 0x58d   : > { %v1524_v16 = vadd.f32 1.0, %v2385_v10 }
 0x58e   : > { %v2387_v43 = vpop.eup %2386 }
 0x58f   : > { %2392 = vrcp.f32 %v1524_v16  ;;  %v1530_v38 = vadd.f32 1.0, %v2387_v43  ;;  %v2389_v34 = vpop.eup %2388 }
 0x590   : > { %v2391_v36 = vpop.eup %2390 }
 0x591   : > { %2394 = vrcp.f32 %v1530_v38  ;;  %v1537_v30 = vadd.f32 1.0, %v2391_v36 }
 0x593   : > { %2396 = vrcp.f32 %v1537_v30 }
 0x59c   : > { %v2393_v40 = vpop.eup %2392 }
 0x59d   : > { %v1541_v11 = vmul.f32 %v2393_v40, %v2389_v34 }
 0x59e   : > { %v2395_v46 = vpop.eup %2394 }
 0x59f   : > { %v1540_v31 = vmul.f32 %v2395_v46, %v3348_v53  ;;  %v3446_v53 = vld [vmem:[%s2915_s8 + $0x8c] ss:$16 sps:$4 sm:$0xff]  }
 0x5a0   : > { %v2397_v44 = vpop.eup %2396 }
 0x5a1   : > { %v3396_v28 = vadd.f32 %v1541_v11, %v1540_v31 }
 0x5a3   : > { %2398 = vtanh.f32 %v3396_v28 }
 0x5b0   : > { %v2399_v0 = vpop.eup %2398 }
 0x5b1   : > { %v1544_v45 = vmul.f32 %v2399_v0, %v2397_v44  ;;  %v2474_v0 = vld [vmem:[%s2915_s8 + $0x20] ss:$16 sps:$4 sm:$0xff]  }
 0x5b3   : > { %1545 = vst [vmem:[#allocation2 + $0x8] sm:$0xff] %v1544_v45  ;;  %v1550_v29 = vpack.c.bf16 %v1544_v45, %v1544_v45  ;;  %v2475_v45 = vld [vmem:[%s2915_s8 + $0x28] ss:$16 sps:$4 sm:$0xff]  }
 0x5b5   : > { %1584 = vmatmul.mubr.bf16.vlgmr.msra.gmra.mxu0 %v1550_v29  ;;  %1625 = vmatmul.mubr.bf16.vlgmr.msra.gmra.mxu1 %v1550_v29  ;;  %v2476_v29 = vld [vmem:[%s2915_s8 + $0x4] ss:$16 sps:$4 sm:$0xff]  }
 0x5b6   : > { %1668 = vmatpush1.bf16.msra.mxu0 %v3400_v13  ;;  %1709 = vmatpush1.bf16.msra.mxu1 %v3404_v42 }
 0x5b7   : > { %1669 = vmatprep.subr.bf16.mxu0 %v3408_v54  ;;  %1710 = vmatprep.subr.bf16.mxu1 %v3412_v41 }
 0x5b8   : > { %1699 = vmatprep.mubr.bf16.mxu0 %v3622_v26  ;;  %1740 = vmatprep.mubr.bf16.mxu1 %v3622_v26 }
 0x5ba   : > { %1670 = vmatpush1.bf16.msra.mxu0 %v3418_v35  ;;  %1711 = vmatpush1.bf16.msra.mxu1 %v3422_v33 }
 0x5bb   : > { %1671 = vmatprep.subr.bf16.mxu0 %v3426_v39  ;;  %1712 = vmatprep.subr.bf16.mxu1 %v3430_v24 }
 0x5be   : > { %1672 = vmatpush1.bf16.msra.mxu0 %v3434_v12  ;;  %1713 = vmatpush1.bf16.msra.mxu1 %v3438_v23 }
 0x5bf   : > { %1673 = vmatprep.subr.bf16.mxu0 %v3442_v27  ;;  %1714 = vmatprep.subr.bf16.mxu1 %v3446_v53 }
 0x5c2   : > { %1674 = vmatpush1.bf16.msra.mxu0 %v3450_v37  ;;  %1715 = vmatpush1.bf16.msra.mxu1 %v3454_v1 }
 0x5c3   : > { %1675 = vmatprep.subr.bf16.mxu0 %v3458_v32  ;;  %1716 = vmatprep.subr.bf16.mxu1 %v3462_v25 }
 0x5c6   : > { %1676 = vmatpush1.bf16.msra.mxu0 %v3466_v49  ;;  %1717 = vmatpush1.bf16.msra.mxu1 %v3470_v50 }
 0x5c7   : > { %1677 = vmatprep.subr.bf16.mxu0 %v3474_v51  ;;  %1718 = vmatprep.subr.bf16.mxu1 %v3478_v52 }
 0x5ca   : > { %1678 = vmatpush1.bf16.msra.mxu0 %v3482_v55  ;;  %1719 = vmatpush1.bf16.msra.mxu1 %v3486_v56 }
 0x5cb   : > { %1679 = vmatprep.subr.bf16.mxu0 %v3058_v14  ;;  %1720 = vmatprep.subr.bf16.mxu1 %v3061_v15 }
 0x5ce   : > { %1680 = vmatpush1.bf16.msra.mxu0 %v3068_v17  ;;  %1721 = vmatpush1.bf16.msra.mxu1 %v3071_v18  ;;  %v3633_v18 = vld [vmem:[#allocation29_spill] sm:$0xff] }
 0x5cf   : > { %1681 = vmatprep.subr.bf16.mxu0 %v3076_v19  ;;  %1722 = vmatprep.subr.bf16.mxu1 %v3079_v20 }
 0x5d2   : > { %1682 = vmatpush1.bf16.msra.mxu0 %v3084_v21  ;;  %1723 = vmatpush1.bf16.msra.mxu1 %v3087_v22  ;;  %v3634_v22 = vld [vmem:[#allocation30_spill] sm:$0xff] }
 0x5d3   : > { %1783 = vmatprep.subr.bf16.mxu0 %v3384_v47  ;;  %1824 = vmatprep.subr.bf16.mxu1 %v3388_v48 }
 0x675   : > { %v1585_v58 = vpop.f32.mrf.mxu0  ;;  %v1626_v14 = vpop.f32.mrf.mxu1 }
 0x676   : > { %v1633_v15 = vadd.f32 %v1585_v58, %v3632_v59  ;;  %v1635_v48 = vadd.f32 %v1626_v14, %v3635_v3 }
 0x677   : > { %v1587_v60 = vpop.f32.mrf.mxu0  ;;  %v1628_v17 = vpop.f32.mrf.mxu1 }
 0x678   : > { %v2132_v61 = vmul.f32 -1.442695, %v1633_v15  ;;  %v1634_v62 = vadd.f32 %v1587_v60, %v3633_v18  ;;  %v1636_v47 = vadd.f32 %v1628_v17, %v3634_v22 }
 0x679   : > { %v1589_v19 = vpop.f32.mrf.mxu0  ;;  %v1630_v63 = vpop.f32.mrf.mxu1 }
 0x67a   : > { %2400 = vpow2.f32 %v2132_v61  ;;  %v2133_v20 = vmul.f32 -1.442695, %v1634_v62  ;;  %v2134_v5 = vmul.f32 -1.442695, %v1636_v47 }
 0x67b   : > { %v1590_v21 = vpop.f32.mrf.mxu0  ;;  %v1631_v2 = vpop.f32.mrf.mxu1 }
 0x67c   : > { %2402 = vpow2.f32 %v2133_v20 }
 0x67d   : > { %2404 = vtanh.f32 %v1635_v48 }
 0x67e   : > { %2406 = vpow2.f32 %v2134_v5  ;;  %v3640_v5 = vld [vmem:[#allocation35_spill] sm:$0xff] }
 0x687   : > { %v2401_v6 = vpop.eup %2400 }
 0x688   : > { %v1640_v7 = vadd.f32 1.0, %v2401_v6 }
 0x689   : > { %v2403_v8 = vpop.eup %2402 }
 0x68a   : > { %2408 = vrcp.f32 %v1640_v7  ;;  %v1646_v9 = vadd.f32 1.0, %v2403_v8  ;;  %v2405_v10 = vpop.eup %2404 }
 0x68b   : > { %v2407_v16 = vpop.eup %2406 }
 0x68c   : > { %2410 = vrcp.f32 %v1646_v9  ;;  %v1653_v36 = vadd.f32 1.0, %v2407_v16 }
 0x68e   : > { %2412 = vrcp.f32 %v1653_v36 }
 0x697   : > { %v2409_v43 = vpop.eup %2408 }
 0x698   : > { %v1657_v38 = vmul.f32 %v2409_v43, %v2405_v10 }
 0x699   : > { %v2411_v34 = vpop.eup %2410 }
 0x69a   : > { %v1656_v40 = vmul.f32 %v2411_v34, %v3396_v28  ;;  %v2473_v28 = vld [vmem:[%s2915_s8 + $0x2c] ss:$16 sps:$4 sm:$0xff]  }
 0x69b   : > { %v2413_v46 = vpop.eup %2412 }
 0x69c   : > { %v3504_v11 = vadd.f32 %v1657_v38, %v1656_v40 }
 0x69e   : > { %2414 = vtanh.f32 %v3504_v11 }
 0x6ab   : > { %v2415_v30 = vpop.eup %2414 }
 0x6ac   : > { %v1660_v31 = vmul.f32 %v2415_v30, %v2413_v46 }
 0x6ae   : > { %1661 = vst [vmem:[#allocation2 + $0x20] sm:$0xff] %v1660_v31  ;;  %v1666_v44 = vpack.c.bf16 %v1660_v31, %v1660_v31 }
 0x6b0   : > { %1700 = vmatmul.mubr.bf16.vlgmr.msra.gmra.mxu0 %v1666_v44  ;;  %1741 = vmatmul.mubr.bf16.vlgmr.msra.gmra.mxu1 %v1666_v44 }
 0x6b1   : > { %1784 = vmatpush1.bf16.msra.mxu0 %v3400_v13  ;;  %1825 = vmatpush1.bf16.msra.mxu1 %v3404_v42  ;;  %v2477_v13 = vld [vmem:[%s2915_s8 + $0xc] ss:$16 sps:$4 sm:$0xff]   ;;  %v2478_v42 = vld [vmem:[%s2915_s8] ss:$16 sps:$4 sm:$0xff]  }
 0x6b2   : > { %1785 = vmatprep.subr.bf16.mxu0 %v3408_v54  ;;  %1826 = vmatprep.subr.bf16.mxu1 %v3412_v41  ;;  %v2479_v54 = vld [vmem:[%s2915_s8 + $0x8] ss:$16 sps:$4 sm:$0xff]  }
 0x6b3   : > { %1815 = vmatprep.mubr.bf16.mxu0 %v3622_v26  ;;  %1856 = vmatprep.mubr.bf16.mxu1 %v3622_v26  ;;  %v2472_v26 = vld [vmem:[%s2915_s8 + $0x24] ss:$16 sps:$4 sm:$0xff]  }
 0x6b5   : > { %1786 = vmatpush1.bf16.msra.mxu0 %v3418_v35  ;;  %1827 = vmatpush1.bf16.msra.mxu1 %v3422_v33  ;;  %v3636_v33 = vld [vmem:[#allocation31_spill] sm:$0xff] }
 0x6b6   : > { %1787 = vmatprep.subr.bf16.mxu0 %v3426_v39  ;;  %1828 = vmatprep.subr.bf16.mxu1 %v3430_v24 }
 0x6b9   : > { %1788 = vmatpush1.bf16.msra.mxu0 %v3434_v12  ;;  %1829 = vmatpush1.bf16.msra.mxu1 %v3438_v23 }
 0x6ba   : > { %1789 = vmatprep.subr.bf16.mxu0 %v3442_v27  ;;  %1830 = vmatprep.subr.bf16.mxu1 %v3446_v53  ;;  %v3637_v27 = vld [vmem:[#allocation33_spill] sm:$0xff] }
 0x6bd   : > { %1790 = vmatpush1.bf16.msra.mxu0 %v3450_v37  ;;  %1831 = vmatpush1.bf16.msra.mxu1 %v3454_v1 }
 0x6be   : > { %1791 = vmatprep.subr.bf16.mxu0 %v3458_v32  ;;  %1832 = vmatprep.subr.bf16.mxu1 %v3462_v25 }
 0x6c1   : > { %1792 = vmatpush1.bf16.msra.mxu0 %v3466_v49  ;;  %1833 = vmatpush1.bf16.msra.mxu1 %v3470_v50  ;;  %v3638_v50 = vld [vmem:[#allocation34_spill] sm:$0xff] }
 0x6c2   : > { %1793 = vmatprep.subr.bf16.mxu0 %v3474_v51  ;;  %1834 = vmatprep.subr.bf16.mxu1 %v3478_v52  ;;  %v3639_v52 = vld [vmem:[#allocation32_spill] sm:$0xff] }
 0x6c5   : > { %1794 = vmatpush1.bf16.msra.mxu0 %v3482_v55  ;;  %1835 = vmatpush1.bf16.msra.mxu1 %v3486_v56 }
 0x6c6   : > { %1795 = vmatprep.subr.bf16.mxu0 %v2472_v26  ;;  %1836 = vmatprep.subr.bf16.mxu1 %v2473_v28 }
 0x6c9   : > { %1796 = vmatpush1.bf16.msra.mxu0 %v2474_v0  ;;  %1837 = vmatpush1.bf16.msra.mxu1 %v2475_v45 }
 0x6ca   : > { %1797 = vmatprep.subr.bf16.mxu0 %v2476_v29  ;;  %1838 = vmatprep.subr.bf16.mxu1 %v2477_v13 }
 0x6cd   : > { %1798 = vmatpush1.bf16.msra.mxu0 %v2478_v42  ;;  %1839 = vmatpush1.bf16.msra.mxu1 %v2479_v54 }
 0x770   : > { %v1701_v41 = vpop.f32.mrf.mxu0  ;;  %v1742_v35 = vpop.f32.mrf.mxu1 }
 0x771   : > { %v1749_v39 = vadd.f32 %v1701_v41, %v3636_v33  ;;  %v1751_v55 = vadd.f32 %v1742_v35, %v3639_v52 }
 0x772   : > { %v1703_v24 = vpop.f32.mrf.mxu0  ;;  %v1744_v12 = vpop.f32.mrf.mxu1 }
 0x773   : > { %v2135_v23 = vmul.f32 -1.442695, %v1749_v39  ;;  %v1750_v53 = vadd.f32 %v1703_v24, %v3637_v27  ;;  %v1752_v51 = vadd.f32 %v1744_v12, %v3638_v50 }
 0x774   : > { %v1705_v37 = vpop.f32.mrf.mxu0  ;;  %v1746_v1 = vpop.f32.mrf.mxu1 }
 0x775   : > { %2416 = vpow2.f32 %v2135_v23  ;;  %v2136_v32 = vmul.f32 -1.442695, %v1750_v53  ;;  %v2137_v56 = vmul.f32 -1.442695, %v1752_v51 }
 0x776   : > { %v1706_v25 = vpop.f32.mrf.mxu0  ;;  %v1747_v49 = vpop.f32.mrf.mxu1 }
 0x777   : > { %2418 = vpow2.f32 %v2136_v32 }
 0x778   : > { %2420 = vtanh.f32 %v1751_v55 }
 0x779   : > { %2422 = vpow2.f32 %v2137_v56 }
 0x782   : > { %v2417_v58 = vpop.eup %2416 }
 0x783   : > { %v1756_v14 = vadd.f32 1.0, %v2417_v58 }
 0x784   : > { %v2419_v59 = vpop.eup %2418 }
 0x785   : > { %2424 = vrcp.f32 %v1756_v14  ;;  %v1762_v15 = vadd.f32 1.0, %v2419_v59  ;;  %v2421_v60 = vpop.eup %2420 }
 0x786   : > { %v2423_v17 = vpop.eup %2422 }
 0x787   : > { %2426 = vrcp.f32 %v1762_v15  ;;  %v1769_v19 = vadd.f32 1.0, %v2423_v17 }
 0x789   : > { %2428 = vrcp.f32 %v1769_v19 }
 0x792   : > { %v2425_v61 = vpop.eup %2424 }
 0x793   : > { %v1773_v18 = vmul.f32 %v2425_v61, %v2421_v60 }
 0x794   : > { %v2427_v62 = vpop.eup %2426 }
 0x795   : > { %v1772_v63 = vmul.f32 %v2427_v62, %v3504_v11  ;;  %v3641_v11 = vld [vmem:[#allocation36_spill] sm:$0xff] }
 0x796   : > { %v2429_v21 = vpop.eup %2428 }
 0x797   : > { %v1774_v20 = vadd.f32 %v1773_v18, %v1772_v63 }
 0x799   : > { %2430 = vtanh.f32 %v1774_v20 }
 0x7a6   : > { %v2431_v2 = vpop.eup %2430 }
 0x7a7   : > { %v1776_v22 = vmul.f32 %v2431_v2, %v2429_v21 }
 0x7a9   : > { %1777 = vst [vmem:[#allocation2 + $0x28] sm:$0xff] %v1776_v22  ;;  %v1782_v47 = vpack.c.bf16 %v1776_v22, %v1776_v22 }
 0x7ab   : > { %1816 = vmatmul.mubr.bf16.vlgmr.msra.gmra.mxu0 %v1782_v47  ;;  %1857 = vmatmul.mubr.bf16.vlgmr.msra.gmra.mxu1 %v1782_v47 }
 0x86b   : > { %v1817_v3 = vpop.f32.mrf.mxu0  ;;  %v1858_v48 = vpop.f32.mrf.mxu1 }
 0x86c   : > { %v1865_v6 = vadd.f32 %v1817_v3, %v3640_v5  ;;  %v1867_v46 = vadd.f32 %v1858_v48, %v3641_v11 }
 0x86d   : > { %v1819_v7 = vpop.f32.mrf.mxu0  ;;  %v1860_v8 = vpop.f32.mrf.mxu1 }
 0x86e   : > { %v2138_v9 = vmul.f32 -1.442695, %v1865_v6  ;;  %v1866_v10 = vadd.f32 %v1819_v7, %v3212_v57  ;;  %v1868_v40 = vadd.f32 %v1860_v8, %v3215_v4 }
 0x86f   : > { %v1821_v16 = vpop.f32.mrf.mxu0  ;;  %v1862_v43 = vpop.f32.mrf.mxu1 }
 0x870   : > { %2432 = vpow2.f32 %v2138_v9  ;;  %v2139_v38 = vmul.f32 -1.442695, %v1866_v10  ;;  %v2140_v30 = vmul.f32 -1.442695, %v1868_v40 }
 0x871   : > { %v1822_v34 = vpop.f32.mrf.mxu0  ;;  %v1863_v36 = vpop.f32.mrf.mxu1 }
 0x872   : > { %2434 = vpow2.f32 %v2139_v38 }
 0x873   : > { %2436 = vtanh.f32 %v1867_v46 }
 0x874   : > { %2438 = vpow2.f32 %v2140_v30 }
 0x87d   : > { %v2433_v31 = vpop.eup %2432 }
 0x87e   : > { %v1872_v44 = vadd.f32 1.0, %v2433_v31 }
 0x87f   : > { %v2435_v26 = vpop.eup %2434 }
 0x880   : > { %2440 = vrcp.f32 %v1872_v44  ;;  %v1878_v28 = vadd.f32 1.0, %v2435_v26  ;;  %v2437_v57 = vpop.eup %2436 }
 0x881   : > { %v2439_v0 = vpop.eup %2438 }
 0x882   : > { %2442 = vrcp.f32 %v1878_v28  ;;  %v1885_v42 = vadd.f32 1.0, %v2439_v0 }
 0x884   : > { %2444 = vrcp.f32 %v1885_v42 }
 0x88d   : > { %v2441_v45 = vpop.eup %2440 }
 0x88e   : > { %v1889_v29 = vmul.f32 %v2441_v45, %v2437_v57 }
 0x88f   : > { %v2443_v13 = vpop.eup %2442 }
 0x890   : > { %v1888_v54 = vmul.f32 %v2443_v13, %v1774_v20 }
 0x891   : > { %v2445_v4 = vpop.eup %2444 }
 0x892   : > { %v1890_v41 = vadd.f32 %v1889_v29, %v1888_v54 }
 0x894   : > { %2446 = vtanh.f32 %v1890_v41 }
 0x8a0   : > { %1897 = sbr.rel (%p2141_p6) target bundleno = 2481 (0x9b1), region = 68 }
 0x8a1   : > { %v2447_v35 = vpop.eup %2446 }
 0x8a2   : > { %v1892_v33 = vmul.f32 %v2447_v35, %v2445_v4 }
 0x8a4   : > { %1893 = vst [vmem:[#allocation2 + $0x38] sm:$0xff] %v1892_v33 }
 0x8a5   : > { %v2142_v39 = vld [vmem:[%s3581_s4] ss:$0 sm:$0xff]  ;;  %v2672_v12 = vmov 0  }
 0x8a6   : > { %v1905_v24 = vmul.f32 %v2142_v39, %v1892_v33  ;;  %2480 = vset.pattern.permute.xlu0 %v2672_v12  ;;  %v2143_v23 = vld [vmem:[#allocation4] ss:$0 sm:$0xff] }
 0x8a8   : > { %1906 = vadd.xlane.f32.xlu0 %v1905_v24 }
 0x931   : > { %v1907_v27 = vpop.xlane.xlu0 %1906 }
 0x932   : > { %v1915_v53 = vadd.f32 %v2143_v23, %v1907_v27 }
 0x934   : > { %1918 = vperm.xlu0 %2480, %v1915_v53  }
 0x9af   : > { %v1919_v37 = vpop.permute.xlu0 %1918 }
 0x9b0   : > { %1921 = vst [vmem:[#allocation13] sm:$0xff] %v1919_v37 }
 0x9b1 PF: > { %p2182_p8 = scmp.eq.s32.totalorder %s2810_s28, 3  ;;  %s2673_s23 = smov [#allocation13]  }
 0x9b2   : > { %s1929_s26 = sshll.u32 %s2673_s23, 4  ;;  %s1930_s26 = int_to_ptr.vmem [resolvable:$true] %s1929_s26 }
 0x9b3   : > { %s2591_s14 = scalar_lea.vmem %s1930_s26, 128  ;;  %p2598_p3 = scmp.lt.s32.totalorder %s1930_s26, %s1930_s26 }
 0x9b4   : > { %p2592_p9 = scmp.ne.s32.totalorder %s1930_s26, %s2591_s14  ;;  %p2599_p4 = scmp.lt.s32.totalorder %s2591_s14, %s2591_s14 }
 0x9b6   : > { %p2593_p11 = pnand %p2592_p9, %p2182_p8  ;;  %p2600_p13 = por %p2599_p4, %p2598_p3 }
 0x9b8   : > { %p2594_p12 = pneg %p2593_p11 }
 0x9ba   : > { %p2601_p0 = pnand %p2600_p13, %p2594_p12 }
 0x9bc   : > { %2604 = shalt.err (!%p2601_p0)
}
 0x9bd   : > { %2162 = dma.vmem_to_hbm [thread:$0]  (%p2182_p8), %s1930_s26, 128, %s3583_s6, [#allocation7]  }
 0x9be   : > { %2644 = dma.done.wait (%p2182_p8), [#allocation7], 128  }
 0x9bf   : > { %2646 = vsyncadd (%p2182_p8), [#allocation7], 4294967168 }
 0x9c0 PF: > { %p23_p2 = scmp.ge.s32.totalorder %s2733_s5, 6   ;;  %s3642_s23 = smov %s2653_s24 }
 0x9c1   : > { %s3643_s24 = smov %s2657_s25  ;;  %s3644_s25 = smov %s2743_s29 }
 0x9c2   : > { %s3645_s26 = smov %s2733_s5  ;;  %25 = sbr.rel (!%p23_p2) target bundleno = 10 (0xa), region = 118 }
 0x9c7   :  { %1942 = vsyncpa [#allocation6], 1 }
 0x9c8   :  { %1944 = vsyncpa [#allocation6 + $0x1], 1 }
 0x9c9   :  { %1945 = vsyncpa [#allocation9], 1 }
 0x9ca   :  { %1947 = vsyncpa [#allocation9 + $0x1], 1 }
 0x9cb   :  { %1948 = vsyncpa [#allocation12], 1 }
 0x9cc   :  { %1950 = vsyncpa [#allocation12 + $0x1], 1 }
 0x9cd   :  { %1951 = vsyncpa [#allocation7], 1 }
 0x9ce   :  { %1953 = vsyncpa [#allocation7 + $0x1], 1 }

</bundles_post_ra>
